<compile_context>
chip_gen: v7x
topology: tpu7x:2x2x1
jax: 0.10.0
libtpu: 0.0.40
codegen_flags: <defaults>
</compile_context>

<pallas_src>
import jax
import jax.numpy as jnp
import numpy as np
from jax.experimental import pallas as pl
from jax.experimental.pallas import tpu as pltpu

EPS = 1e-5


def _mix_experts(att_col, w_ref):
    """att_col: (K, 1) per-sample gates.  w_ref: (K, Cout, Cin) expert weights.

    Returns W = sum_k att[k] * W_k, shape (Cout, Cin), as a log2(K)-deep tree
    of scaled adds (no 16-deep dependent VPU chain).
    """
    k_total = w_ref.shape[0]
    terms = [att_col[k:k + 1, :] * w_ref[k] for k in range(k_total)]
    while len(terms) > 1:
        nxt = [terms[i] + terms[i + 1] for i in range(0, len(terms) - 1, 2)]
        if len(terms) % 2:
            nxt.append(terms[-1])
        terms = nxt
    return terms[0]


def _basic_block_kernel(x_ref, attw1_ref, w1_ref, attw2_ref, w2_ref, bn_ref,
                        o_ref, stat_ref):
    # Grid = (phase, batch block); phase is the slow axis so each BN sees the
    # full batch statistics of the previous phase before it starts.
    ph = pl.program_id(0)
    g = pl.program_id(1)

    B = o_ref.shape[0]
    Cout = o_ref.shape[1]
    P = o_ref.shape[2]
    Bt = x_ref.shape[0]                      # samples per grid step
    base = g * Bt
    inv_bp = 1.0 / float(B * P)

    # stat scratch columns: [sum1, sumsq1, sum2, sumsq2, sc1, sh1, sc2, sh2]
    @pl.when(jnp.logical_and(ph == 0, g == 0))
    def _init_stats():
        stat_ref[...] = jnp.zeros_like(stat_ref)

    # ---------------- phase 0: CondConv1, stage y into o_ref -----------------
    @pl.when(ph == 0)
    def _conv1():
        def body(i, acc):
            xb = x_ref[i].astype(jnp.float32)                    # (Cin, P)
            pooled = jnp.mean(xb, axis=1, keepdims=True)         # (Cin, 1)
            att = jax.nn.sigmoid(
                jnp.dot(attw1_ref[...], pooled,
                        preferred_element_type=jnp.float32))     # (K, 1)
            w = _mix_experts(att, w1_ref)                        # (Cout, Cin)
            yb = jnp.dot(w, xb, preferred_element_type=jnp.float32)  # (Cout, P)
            o_ref[base + i] = yb.astype(o_ref.dtype)             # stage pre-BN y
            s = jnp.sum(yb, axis=1, keepdims=True)
            sq = jnp.sum(yb * yb, axis=1, keepdims=True)
            return acc + jnp.concatenate([s, sq], axis=1)

        acc = jax.lax.fori_loop(0, Bt, body,
                                jnp.zeros((Cout, 2), jnp.float32), unroll=True)
        stat_ref[:, 0:2] += acc               # single coalesced stat update

    # ---------------- phase 1: BN1 + ReLU + CondConv2, stage z in o_ref ------
    @pl.when(ph == 1)
    def _conv2():
        @pl.when(g == 0)
        def _fold_bn1():                      # hoisted: once per phase
            mu = stat_ref[:, 0:1] * inv_bp
            var = stat_ref[:, 1:2] * inv_bp - mu * mu
            sc = jax.lax.rsqrt(var + EPS) * bn_ref[:, 0:1]
            sh = bn_ref[:, 1:2] - mu * sc
            stat_ref[:, 4:6] = jnp.concatenate([sc, sh], axis=1)

        sc1 = stat_ref[:, 4:5]
        sh1 = stat_ref[:, 5:6]

        def body(i, acc):
            idx = base + i
            yb = jnp.maximum(o_ref[idx] * sc1 + sh1, 0.0)        # (Cout, P)
            pooled = jnp.mean(yb, axis=1, keepdims=True)
            att = jax.nn.sigmoid(
                jnp.dot(attw2_ref[...], pooled,
                        preferred_element_type=jnp.float32))     # (K, 1)
            w = _mix_experts(att, w2_ref)                        # (Cout, Cout)
            zb = jnp.dot(w, yb, preferred_element_type=jnp.float32)  # (Cout, P)
            o_ref[idx] = zb.astype(o_ref.dtype)                  # stage pre-BN z
            s = jnp.sum(zb, axis=1, keepdims=True)
            sq = jnp.sum(zb * zb, axis=1, keepdims=True)
            return acc + jnp.concatenate([s, sq], axis=1)

        acc = jax.lax.fori_loop(0, Bt, body,
                                jnp.zeros((Cout, 2), jnp.float32), unroll=True)
        stat_ref[:, 2:4] += acc

    # ---------------- phase 2: BN2 + residual + ReLU, finalize in place ------
    @pl.when(ph == 2)
    def _finalize():
        @pl.when(g == 0)
        def _fold_bn2():
            mu = stat_ref[:, 2:3] * inv_bp
            var = stat_ref[:, 3:4] * inv_bp - mu * mu
            sc = jax.lax.rsqrt(var + EPS) * bn_ref[:, 2:3]
            sh = bn_ref[:, 3:4] - mu * sc
            stat_ref[:, 6:8] = jnp.concatenate([sc, sh], axis=1)

        sc2 = stat_ref[:, 6:7]
        sh2 = stat_ref[:, 7:8]

        def body(i, carry):
            idx = base + i
            zb = o_ref[idx] * sc2 + sh2 + x_ref[i].astype(jnp.float32)
            o_ref[idx] = jnp.maximum(zb, 0.0).astype(o_ref.dtype)
            return carry

        jax.lax.fori_loop(0, Bt, body, 0, unroll=True)


def basic_block_forward(x_nchw, params, *, batch_tile=None):
    """x_nchw: (B, C, H, W) float32.  Returns (B, C, H, W) float32."""
    B, C, H, W = x_nchw.shape
    K, Cout, Cin = params["w1"].shape
    assert Cin == C and Cout == C, "downsample=None requires inplanes == planes"
    P = H * W

    # Batch tile: Bt samples per grid step (largest divisor of B up to 8).
    if batch_tile is None:
        batch_tile = min(B, 8)
        while B % batch_tile:
            batch_tile -= 1
    Bt = int(batch_tile)
    assert B % Bt == 0, "batch_tile must divide the batch size"
    G = B // Bt

    # Channels-second layout — straight reshape from NCHW, no transpose glue.
    x = x_nchw.reshape(B, Cin, P).astype(jnp.float32)
    w1 = params["w1"].astype(jnp.float32)       # (K, Cout, Cin)
    w2 = params["w2"].astype(jnp.float32)       # (K, Cout, Cout)
    attw1 = params["att1"].astype(jnp.float32)  # (K, Cin)
    attw2 = params["att2"].astype(jnp.float32)  # (K, Cout)
    # BN affine params packed as columns: [g1, b1, g2, b2]  -> (Cout, 4)
    bn = jnp.stack(
        [params["g1"], params["b1"], params["g2"], params["b2"]], axis=1
    ).astype(jnp.float32)

    # VMEM budget from the actual footprint (+25% headroom), capped for v7x.
    f32b = 4
    resident_out = B * Cout * P * f32b                  # constant-index out block
    x_stream = 2 * Bt * Cin * P * f32b                  # double-buffered x blocks
    weights = (attw1.size + w1.size + attw2.size + w2.size + bn.size) * f32b
    scratch = Cout * 8 * f32b
    vmem_bytes = int((resident_out + x_stream + weights + scratch) * 1.25)
    vmem_bytes = max(vmem_bytes + (2 << 20), 16 << 20)
    vmem_bytes = min(vmem_bytes, 48 << 20)              # stay under v7x's 64 MiB

    grid = (3, G)                                       # (phase, batch block)
    resident = dict(pipeline_mode=pl.Buffered(1))       # fetched once, 1 buffer

    out = pl.pallas_call(
        _basic_block_kernel,
        out_shape=jax.ShapeDtypeStruct((B, Cout, P), jnp.float32),
        grid_spec=pltpu.PrefetchScalarGridSpec(
            num_scalar_prefetch=0,
            grid=grid,
            in_specs=[
                # x: streamed per batch block; only needed in phases 0 and 2,
                # so the block index collapses to a constant during phase 1
                # (no per-block DMA issued there).
                pl.BlockSpec((Bt, Cin, P),
                             lambda ph, g: (jnp.where(ph == 1, 0, g), 0, 0)),
                # Small weights: constant index map -> fetched once, resident,
                # single-buffered (double-buffering them is pure VMEM waste).
                pl.BlockSpec((K, Cin), lambda ph, g: (0, 0), **resident),
                pl.BlockSpec((K, Cout, Cin), lambda ph, g: (0, 0, 0), **resident),
                pl.BlockSpec((K, Cout), lambda ph, g: (0, 0), **resident),
                pl.BlockSpec((K, Cout, Cout), lambda ph, g: (0, 0, 0), **resident),
                pl.BlockSpec((Cout, 4), lambda ph, g: (0, 0), **resident),
            ],
            # Output block constant across the whole grid -> resident in VMEM;
            # used as the (only) staging buffer for y and z, written back to
            # HBM once at the end.
            out_specs=pl.BlockSpec((B, Cout, P), lambda ph, g: (0, 0, 0)),
            # Per-channel BN sums/sumsq + folded scale/shift for both layers.
            scratch_shapes=[pltpu.VMEM((Cout, 8), jnp.float32)],
        ),
        compiler_params=pltpu.CompilerParams(
            # Both axes sequential: phases are ordered and BN batch stats
            # accumulate in a single scratch across the batch axis.
            dimension_semantics=("arbitrary", "arbitrary"),
            vmem_limit_bytes=vmem_bytes,
        ),
    )(x, attw1, w1, attw2, w2, bn)

    return out.reshape(B, Cout, H, W)


# ------------------------- pure-JAX reference (NCHW) --------------------------
def _condconv_ref(x, att_w, w):
    pooled = jnp.mean(x, axis=(2, 3))                    # (B, Cin)
    att = jax.nn.sigmoid(pooled @ att_w.T)               # (B, K)
    agg = jnp.einsum('bk,koc->boc', att, w)              # (B, Cout, Cin)
    return jnp.einsum('boc,bchw->bohw', agg, x)


def _bn_train_ref(x, g, b):
    mu = jnp.mean(x, axis=(0, 2, 3), keepdims=True)
    var = jnp.mean((x - mu) ** 2, axis=(0, 2, 3), keepdims=True)
    return ((x - mu) / jnp.sqrt(var + EPS)) * g.reshape(1, -1, 1, 1) + b.reshape(1, -1, 1, 1)


def basic_block_ref(x, params):
    y = _condconv_ref(x, params["att1"], params["w1"])
    y = jax.nn.relu(_bn_train_ref(y, params["g1"], params["b1"]))
    z = _condconv_ref(y, params["att2"], params["w2"])
    z = _bn_train_ref(z, params["g2"], params["b2"]) + x
    return jax.nn.relu(z)


if __name__ == "__main__":
    B, Cin, H, W = 4, 8, 16, 16
    planes = Cin              # stride=1, downsample=None  ->  inplanes == planes
    K = 16                    # CondConv expert count (from conv3x3: K=16)

    key = jax.random.PRNGKey(0)
    ks = jax.random.split(key, 5)
    params = {
        # Attention 1x1 conv weights, kaiming_normal(fan_out=K, relu)
        "att1": jax.random.normal(ks[0], (K, Cin), jnp.float32) * (2.0 / K) ** 0.5,
        "att2": jax.random.normal(ks[1], (K, planes), jnp.float32) * (2.0 / K) ** 0.5,
        # CondConv expert weights (K, out, in) — kaiming_uniform-ish per expert
        "w1": (jax.random.uniform(ks[2], (K, planes, Cin), jnp.float32, -1.0, 1.0)
               * (6.0 / Cin) ** 0.5),
        "w2": (jax.random.uniform(ks[3], (K, planes, planes), jnp.float32, -1.0, 1.0)
               * (6.0 / planes) ** 0.5),
        # BatchNorm affine params at init
        "g1": jnp.ones((planes,), jnp.float32),
        "b1": jnp.zeros((planes,), jnp.float32),
        "g2": jnp.ones((planes,), jnp.float32),
        "b2": jnp.zeros((planes,), jnp.float32),
    }
    x = jax.random.normal(ks[4], (B, Cin, H, W), jnp.float32)

    # batch_tile=2 -> grid (3, 2): exercises multi-step batch blocking, the
    # hoisted BN fold (g==0) path and the phase-1 constant x index.
    out = jax.block_until_ready(basic_block_forward(x, params, batch_tile=2))
    ref = jax.block_until_ready(basic_block_ref(x, params))

    assert out.shape == (B, planes, H, W)
    np.testing.assert_allclose(np.asarray(out), np.asarray(ref), rtol=2e-3, atol=2e-3)
    print("KERNEL_OK")
</pallas_src>

<mosaic_0001>
module attributes {stable_mosaic.version = 11 : i64} {
  func.func @_basic_block_kernel(%arg0: i32, %arg1: i32, %arg2: memref<2x8x256xf32, #tpu.memory_space<vmem>>, %arg3: memref<16x8xf32, #tpu.memory_space<vmem>>, %arg4: memref<16x8x8xf32, #tpu.memory_space<vmem>>, %arg5: memref<16x8xf32, #tpu.memory_space<vmem>>, %arg6: memref<16x8x8xf32, #tpu.memory_space<vmem>>, %arg7: memref<8x4xf32, #tpu.memory_space<vmem>>, %arg8: memref<4x8x256xf32, #tpu.memory_space<vmem>>, %arg9: memref<8x8xf32, #tpu.memory_space<vmem>>) attributes {dimension_semantics = [#tpu.dimension_semantics<arbitrary>, #tpu.dimension_semantics<arbitrary>], iteration_bounds = array<i64: 3, 2>, scalar_prefetch = 0 : i64, scratch_operands = 1 : i64, tpu.core_type = #tpu.core_type<tc>, window_params = [{transform_indices = @transform_0, window_bounds = array<i64: 2, 8, 256>}, {pipeline_mode = #tpu.pipeline_mode<synchronous>, transform_indices = @transform_1, window_bounds = array<i64: 16, 8>}, {pipeline_mode = #tpu.pipeline_mode<synchronous>, transform_indices = @transform_2, window_bounds = array<i64: 16, 8, 8>}, {pipeline_mode = #tpu.pipeline_mode<synchronous>, transform_indices = @transform_3, window_bounds = array<i64: 16, 8>}, {pipeline_mode = #tpu.pipeline_mode<synchronous>, transform_indices = @transform_4, window_bounds = array<i64: 16, 8, 8>}, {pipeline_mode = #tpu.pipeline_mode<synchronous>, transform_indices = @transform_5, window_bounds = array<i64: 8, 4>}, {pipeline_mode = #tpu.pipeline_mode<synchronous>, transform_indices = @transform_6, window_bounds = array<i64: 4, 8, 256>}]} {
    %c2_i32 = arith.constant 2 : i32
    %0 = arith.muli %arg1, %c2_i32 : i32
    %c0_i32 = arith.constant 0 : i32
    %1 = arith.cmpi eq, %arg0, %c0_i32 : i32
    %c0_i32_0 = arith.constant 0 : i32
    %2 = arith.cmpi eq, %arg1, %c0_i32_0 : i32
    %3 = arith.andi %1, %2 : i1
    %4 = arith.extui %3 : i1 to i32
    %c0_i32_1 = arith.constant 0 : i32
    %5 = arith.cmpi ne, %4, %c0_i32_1 : i32
    scf.if %5 {
      %cst = arith.constant 0.000000e+00 : f32
      %15 = vector.broadcast %cst : f32 to vector<8x8xf32>
      %c0 = arith.constant 0 : index
      %c0_7 = arith.constant 0 : index
      %16 = vector.load %arg9[%c0, %c0_7] : memref<8x8xf32, #tpu.memory_space<vmem>>, vector<8x8xf32>
      tpu.vector_store %arg9[%c0, %c0_7], %15 {strides = array<i32>} : memref<8x8xf32, #tpu.memory_space<vmem>>, vector<8x8xf32>,
    } else {
    }
    %c0_i32_2 = arith.constant 0 : i32
    %6 = arith.cmpi eq, %arg0, %c0_i32_2 : i32
    %7 = arith.extui %6 : i1 to i32
    %c0_i32_3 = arith.constant 0 : i32
    %8 = arith.cmpi ne, %7, %c0_i32_3 : i32
    scf.if %8 {
      %cst = arith.constant 0.000000e+00 : f32
      %15 = vector.broadcast %cst : f32 to vector<8x2xf32>
      %c0_i32_7 = arith.constant 0 : i32
      %16 = arith.index_cast %c0_i32_7 : i32 to index
      %c0 = arith.constant 0 : index
      %c0_8 = arith.constant 0 : index
      %17 = vector.load %arg2[%16, %c0, %c0_8] : memref<2x8x256xf32, #tpu.memory_space<vmem>>, vector<1x8x256xf32>
      %18 = vector.shape_cast %17 : vector<1x8x256xf32> to vector<8x256xf32>
      %cst_9 = arith.constant dense<0.000000e+00> : vector<8xf32>
      %19 = vector.multi_reduction <add>, %18, %cst_9 [1] : vector<8x256xf32> to vector<8xf32>
      %20 = vector.shape_cast %19 : vector<8xf32> to vector<8x1xf32>
      %cst_10 = arith.constant 2.560000e+02 : f32
      %21 = vector.broadcast %cst_10 : f32 to vector<8x1xf32>
      %22 = arith.divf %20, %21 : vector<8x1xf32>
      %c0_11 = arith.constant 0 : index
      %c0_12 = arith.constant 0 : index
      %23 = vector.load %arg3[%c0_11, %c0_12] : memref<16x8xf32, #tpu.memory_space<vmem>>, vector<16x8xf32>
      %cst_13 = arith.constant dense<0.000000e+00> : vector<16x1xf32>
      %24 = tpu.matmul %23, %22, %cst_13 {dimension_numbers = #tpu.dot_dimension_numbers<[1], [0], [0], [1], [0, 0, 1, 1], [], []>} : vector<16x8xf32>, vector<8x1xf32>, vector<16x1xf32> -> vector<16x1xf32>
      %25 = arith.negf %24 : vector<16x1xf32>
      %26 = math.exp %25 : vector<16x1xf32>
      %cst_14 = arith.constant 1.000000e+00 : f32
      %27 = vector.broadcast %cst_14 : f32 to vector<16x1xf32>
      %28 = arith.addf %27, %26 : vector<16x1xf32>
      %29 = arith.divf %27, %28 : vector<16x1xf32>
      %30 = vector.extract_strided_slice %29 {offsets = [0, 0], sizes = [1, 1], strides = [1, 1]} : vector<16x1xf32> to vector<1x1xf32>
      %c0_15 = arith.constant 0 : index
      %c0_16 = arith.constant 0 : index
      %c0_17 = arith.constant 0 : index
      %31 = vector.load %arg4[%c0_15, %c0_16, %c0_17] : memref<16x8x8xf32, #tpu.memory_space<vmem>>, vector<1x8x8xf32>
      %32 = vector.shape_cast %31 : vector<1x8x8xf32> to vector<8x8xf32>
      %33 = vector.broadcast %30 : vector<1x1xf32> to vector<8x8xf32>
      %34 = arith.mulf %33, %32 : vector<8x8xf32>
      %35 = vector.extract_strided_slice %29 {offsets = [1, 0], sizes = [1, 1], strides = [1, 1]} : vector<16x1xf32> to vector<1x1xf32>
      %c1 = arith.constant 1 : index
      %c0_18 = arith.constant 0 : index
      %c0_19 = arith.constant 0 : index
      %36 = vector.load %arg4[%c1, %c0_18, %c0_19] : memref<16x8x8xf32, #tpu.memory_space<vmem>>, vector<1x8x8xf32>
      %37 = vector.shape_cast %36 : vector<1x8x8xf32> to vector<8x8xf32>
      %38 = vector.broadcast %35 : vector<1x1xf32> to vector<8x8xf32>
      %39 = arith.mulf %38, %37 : vector<8x8xf32>
      %40 = vector.extract_strided_slice %29 {offsets = [2, 0], sizes = [1, 1], strides = [1, 1]} : vector<16x1xf32> to vector<1x1xf32>
      %c2 = arith.constant 2 : index
      %c0_20 = arith.constant 0 : index
      %c0_21 = arith.constant 0 : index
      %41 = vector.load %arg4[%c2, %c0_20, %c0_21] : memref<16x8x8xf32, #tpu.memory_space<vmem>>, vector<1x8x8xf32>
      %42 = vector.shape_cast %41 : vector<1x8x8xf32> to vector<8x8xf32>
      %43 = vector.broadcast %40 : vector<1x1xf32> to vector<8x8xf32>
      %44 = arith.mulf %43, %42 : vector<8x8xf32>
      %45 = vector.extract_strided_slice %29 {offsets = [3, 0], sizes = [1, 1], strides = [1, 1]} : vector<16x1xf32> to vector<1x1xf32>
      %c3 = arith.constant 3 : index
      %c0_22 = arith.constant 0 : index
      %c0_23 = arith.constant 0 : index
      %46 = vector.load %arg4[%c3, %c0_22, %c0_23] : memref<16x8x8xf32, #tpu.memory_space<vmem>>, vector<1x8x8xf32>
      %47 = vector.shape_cast %46 : vector<1x8x8xf32> to vector<8x8xf32>
      %48 = vector.broadcast %45 : vector<1x1xf32> to vector<8x8xf32>
      %49 = arith.mulf %48, %47 : vector<8x8xf32>
      %50 = vector.extract_strided_slice %29 {offsets = [4, 0], sizes = [1, 1], strides = [1, 1]} : vector<16x1xf32> to vector<1x1xf32>
      %c4 = arith.constant 4 : index
      %c0_24 = arith.constant 0 : index
      %c0_25 = arith.constant 0 : index
      %51 = vector.load %arg4[%c4, %c0_24, %c0_25] : memref<16x8x8xf32, #tpu.memory_space<vmem>>, vector<1x8x8xf32>
      %52 = vector.shape_cast %51 : vector<1x8x8xf32> to vector<8x8xf32>
      %53 = vector.broadcast %50 : vector<1x1xf32> to vector<8x8xf32>
      %54 = arith.mulf %53, %52 : vector<8x8xf32>
      %55 = vector.extract_strided_slice %29 {offsets = [5, 0], sizes = [1, 1], strides = [1, 1]} : vector<16x1xf32> to vector<1x1xf32>
      %c5 = arith.constant 5 : index
      %c0_26 = arith.constant 0 : index
      %c0_27 = arith.constant 0 : index
      %56 = vector.load %arg4[%c5, %c0_26, %c0_27] : memref<16x8x8xf32, #tpu.memory_space<vmem>>, vector<1x8x8xf32>
      %57 = vector.shape_cast %56 : vector<1x8x8xf32> to vector<8x8xf32>
      %58 = vector.broadcast %55 : vector<1x1xf32> to vector<8x8xf32>
      %59 = arith.mulf %58, %57 : vector<8x8xf32>
      %60 = vector.extract_strided_slice %29 {offsets = [6, 0], sizes = [1, 1], strides = [1, 1]} : vector<16x1xf32> to vector<1x1xf32>
      %c6 = arith.constant 6 : index
      %c0_28 = arith.constant 0 : index
      %c0_29 = arith.constant 0 : index
      %61 = vector.load %arg4[%c6, %c0_28, %c0_29] : memref<16x8x8xf32, #tpu.memory_space<vmem>>, vector<1x8x8xf32>
      %62 = vector.shape_cast %61 : vector<1x8x8xf32> to vector<8x8xf32>
      %63 = vector.broadcast %60 : vector<1x1xf32> to vector<8x8xf32>
      %64 = arith.mulf %63, %62 : vector<8x8xf32>
      %65 = vector.extract_strided_slice %29 {offsets = [7, 0], sizes = [1, 1], strides = [1, 1]} : vector<16x1xf32> to vector<1x1xf32>
      %c7 = arith.constant 7 : index
      %c0_30 = arith.constant 0 : index
      %c0_31 = arith.constant 0 : index
      %66 = vector.load %arg4[%c7, %c0_30, %c0_31] : memref<16x8x8xf32, #tpu.memory_space<vmem>>, vector<1x8x8xf32>
      %67 = vector.shape_cast %66 : vector<1x8x8xf32> to vector<8x8xf32>
      %68 = vector.broadcast %65 : vector<1x1xf32> to vector<8x8xf32>
      %69 = arith.mulf %68, %67 : vector<8x8xf32>
      %70 = vector.extract_strided_slice %29 {offsets = [8, 0], sizes = [1, 1], strides = [1, 1]} : vector<16x1xf32> to vector<1x1xf32>
      %c8 = arith.constant 8 : index
      %c0_32 = arith.constant 0 : index
      %c0_33 = arith.constant 0 : index
      %71 = vector.load %arg4[%c8, %c0_32, %c0_33] : memref<16x8x8xf32, #tpu.memory_space<vmem>>, vector<1x8x8xf32>
      %72 = vector.shape_cast %71 : vector<1x8x8xf32> to vector<8x8xf32>
      %73 = vector.broadcast %70 : vector<1x1xf32> to vector<8x8xf32>
      %74 = arith.mulf %73, %72 : vector<8x8xf32>
      %75 = vector.extract_strided_slice %29 {offsets = [9, 0], sizes = [1, 1], strides = [1, 1]} : vector<16x1xf32> to vector<1x1xf32>
      %c9 = arith.constant 9 : index
      %c0_34 = arith.constant 0 : index
      %c0_35 = arith.constant 0 : index
      %76 = vector.load %arg4[%c9, %c0_34, %c0_35] : memref<16x8x8xf32, #tpu.memory_space<vmem>>, vector<1x8x8xf32>
      %77 = vector.shape_cast %76 : vector<1x8x8xf32> to vector<8x8xf32>
      %78 = vector.broadcast %75 : vector<1x1xf32> to vector<8x8xf32>
      %79 = arith.mulf %78, %77 : vector<8x8xf32>
      %80 = vector.extract_strided_slice %29 {offsets = [10, 0], sizes = [1, 1], strides = [1, 1]} : vector<16x1xf32> to vector<1x1xf32>
      %c10 = arith.constant 10 : index
      %c0_36 = arith.constant 0 : index
      %c0_37 = arith.constant 0 : index
      %81 = vector.load %arg4[%c10, %c0_36, %c0_37] : memref<16x8x8xf32, #tpu.memory_space<vmem>>, vector<1x8x8xf32>
      %82 = vector.shape_cast %81 : vector<1x8x8xf32> to vector<8x8xf32>
      %83 = vector.broadcast %80 : vector<1x1xf32> to vector<8x8xf32>
      %84 = arith.mulf %83, %82 : vector<8x8xf32>
      %85 = vector.extract_strided_slice %29 {offsets = [11, 0], sizes = [1, 1], strides = [1, 1]} : vector<16x1xf32> to vector<1x1xf32>
      %c11 = arith.constant 11 : index
      %c0_38 = arith.constant 0 : index
      %c0_39 = arith.constant 0 : index
      %86 = vector.load %arg4[%c11, %c0_38, %c0_39] : memref<16x8x8xf32, #tpu.memory_space<vmem>>, vector<1x8x8xf32>
      %87 = vector.shape_cast %86 : vector<1x8x8xf32> to vector<8x8xf32>
      %88 = vector.broadcast %85 : vector<1x1xf32> to vector<8x8xf32>
      %89 = arith.mulf %88, %87 : vector<8x8xf32>
      %90 = vector.extract_strided_slice %29 {offsets = [12, 0], sizes = [1, 1], strides = [1, 1]} : vector<16x1xf32> to vector<1x1xf32>
      %c12 = arith.constant 12 : index
      %c0_40 = arith.constant 0 : index
      %c0_41 = arith.constant 0 : index
      %91 = vector.load %arg4[%c12, %c0_40, %c0_41] : memref<16x8x8xf32, #tpu.memory_space<vmem>>, vector<1x8x8xf32>
      %92 = vector.shape_cast %91 : vector<1x8x8xf32> to vector<8x8xf32>
      %93 = vector.broadcast %90 : vector<1x1xf32> to vector<8x8xf32>
      %94 = arith.mulf %93, %92 : vector<8x8xf32>
      %95 = vector.extract_strided_slice %29 {offsets = [13, 0], sizes = [1, 1], strides = [1, 1]} : vector<16x1xf32> to vector<1x1xf32>
      %c13 = arith.constant 13 : index
      %c0_42 = arith.constant 0 : index
      %c0_43 = arith.constant 0 : index
      %96 = vector.load %arg4[%c13, %c0_42, %c0_43] : memref<16x8x8xf32, #tpu.memory_space<vmem>>, vector<1x8x8xf32>
      %97 = vector.shape_cast %96 : vector<1x8x8xf32> to vector<8x8xf32>
      %98 = vector.broadcast %95 : vector<1x1xf32> to vector<8x8xf32>
      %99 = arith.mulf %98, %97 : vector<8x8xf32>
      %100 = vector.extract_strided_slice %29 {offsets = [14, 0], sizes = [1, 1], strides = [1, 1]} : vector<16x1xf32> to vector<1x1xf32>
      %c14 = arith.constant 14 : index
      %c0_44 = arith.constant 0 : index
      %c0_45 = arith.constant 0 : index
      %101 = vector.load %arg4[%c14, %c0_44, %c0_45] : memref<16x8x8xf32, #tpu.memory_space<vmem>>, vector<1x8x8xf32>
      %102 = vector.shape_cast %101 : vector<1x8x8xf32> to vector<8x8xf32>
      %103 = vector.broadcast %100 : vector<1x1xf32> to vector<8x8xf32>
      %104 = arith.mulf %103, %102 : vector<8x8xf32>
      %105 = vector.extract_strided_slice %29 {offsets = [15, 0], sizes = [1, 1], strides = [1, 1]} : vector<16x1xf32> to vector<1x1xf32>
      %c15 = arith.constant 15 : index
      %c0_46 = arith.constant 0 : index
      %c0_47 = arith.constant 0 : index
      %106 = vector.load %arg4[%c15, %c0_46, %c0_47] : memref<16x8x8xf32, #tpu.memory_space<vmem>>, vector<1x8x8xf32>
      %107 = vector.shape_cast %106 : vector<1x8x8xf32> to vector<8x8xf32>
      %108 = vector.broadcast %105 : vector<1x1xf32> to vector<8x8xf32>
      %109 = arith.mulf %108, %107 : vector<8x8xf32>
      %110 = arith.addf %34, %39 : vector<8x8xf32>
      %111 = arith.addf %44, %49 : vector<8x8xf32>
      %112 = arith.addf %54, %59 : vector<8x8xf32>
      %113 = arith.addf %64, %69 : vector<8x8xf32>
      %114 = arith.addf %74, %79 : vector<8x8xf32>
      %115 = arith.addf %84, %89 : vector<8x8xf32>
      %116 = arith.addf %94, %99 : vector<8x8xf32>
      %117 = arith.addf %104, %109 : vector<8x8xf32>
      %118 = arith.addf %110, %111 : vector<8x8xf32>
      %119 = arith.addf %112, %113 : vector<8x8xf32>
      %120 = arith.addf %114, %115 : vector<8x8xf32>
      %121 = arith.addf %116, %117 : vector<8x8xf32>
      %122 = arith.addf %118, %119 : vector<8x8xf32>
      %123 = arith.addf %120, %121 : vector<8x8xf32>
      %124 = arith.addf %122, %123 : vector<8x8xf32>
      %cst_48 = arith.constant dense<0.000000e+00> : vector<8x256xf32>
      %125 = tpu.matmul %124, %18, %cst_48 {dimension_numbers = #tpu.dot_dimension_numbers<[1], [0], [0], [1], [0, 0, 1, 1], [], []>} : vector<8x8xf32>, vector<8x256xf32>, vector<8x256xf32> -> vector<8x256xf32>
      %126 = arith.addi %0, %c0_i32_7 : i32
      %127 = arith.index_cast %126 : i32 to index
      %c0_49 = arith.constant 0 : index
      %c0_50 = arith.constant 0 : index
      %128 = vector.load %arg8[%127, %c0_49, %c0_50] : memref<4x8x256xf32, #tpu.memory_space<vmem>>, vector<1x8x256xf32>
      %129 = vector.shape_cast %128 : vector<1x8x256xf32> to vector<8x256xf32>
      %130 = vector.shape_cast %125 : vector<8x256xf32> to vector<1x8x256xf32>
      tpu.vector_store %arg8[%127, %c0_49, %c0_50], %130 {strides = array<i32>} : memref<4x8x256xf32, #tpu.memory_space<vmem>>, vector<1x8x256xf32>,
      %cst_51 = arith.constant dense<0.000000e+00> : vector<8xf32>
      %131 = vector.multi_reduction <add>, %125, %cst_51 [1] : vector<8x256xf32> to vector<8xf32>
      %132 = vector.shape_cast %131 : vector<8xf32> to vector<8x1xf32>
      %133 = arith.mulf %125, %125 : vector<8x256xf32>
      %cst_52 = arith.constant dense<0.000000e+00> : vector<8xf32>
      %134 = vector.multi_reduction <add>, %133, %cst_52 [1] : vector<8x256xf32> to vector<8xf32>
      %135 = vector.shape_cast %134 : vector<8xf32> to vector<8x1xf32>
      %136 = tpu.concatenate %132, %135 in 1 : vector<8x1xf32>, vector<8x1xf32> -> vector<8x2xf32>
      %137 = arith.addf %15, %136 : vector<8x2xf32>
      %c1_i32_53 = arith.constant 1 : i32
      %138 = arith.index_cast %c1_i32_53 : i32 to index
      %c0_54 = arith.constant 0 : index
      %c0_55 = arith.constant 0 : index
      %139 = vector.load %arg2[%138, %c0_54, %c0_55] : memref<2x8x256xf32, #tpu.memory_space<vmem>>, vector<1x8x256xf32>
      %140 = vector.shape_cast %139 : vector<1x8x256xf32> to vector<8x256xf32>
      %cst_56 = arith.constant dense<0.000000e+00> : vector<8xf32>
      %141 = vector.multi_reduction <add>, %140, %cst_56 [1] : vector<8x256xf32> to vector<8xf32>
      %142 = vector.shape_cast %141 : vector<8xf32> to vector<8x1xf32>
      %cst_57 = arith.constant 2.560000e+02 : f32
      %143 = vector.broadcast %cst_57 : f32 to vector<8x1xf32>
      %144 = arith.divf %142, %143 : vector<8x1xf32>
      %c0_58 = arith.constant 0 : index
      %c0_59 = arith.constant 0 : index
      %145 = vector.load %arg3[%c0_58, %c0_59] : memref<16x8xf32, #tpu.memory_space<vmem>>, vector<16x8xf32>
      %cst_60 = arith.constant dense<0.000000e+00> : vector<16x1xf32>
      %146 = tpu.matmul %145, %144, %cst_60 {dimension_numbers = #tpu.dot_dimension_numbers<[1], [0], [0], [1], [0, 0, 1, 1], [], []>} : vector<16x8xf32>, vector<8x1xf32>, vector<16x1xf32> -> vector<16x1xf32>
      %147 = arith.negf %146 : vector<16x1xf32>
      %148 = math.exp %147 : vector<16x1xf32>
      %cst_61 = arith.constant 1.000000e+00 : f32
      %149 = vector.broadcast %cst_61 : f32 to vector<16x1xf32>
      %150 = arith.addf %149, %148 : vector<16x1xf32>
      %151 = arith.divf %149, %150 : vector<16x1xf32>
      %152 = vector.extract_strided_slice %151 {offsets = [0, 0], sizes = [1, 1], strides = [1, 1]} : vector<16x1xf32> to vector<1x1xf32>
      %c0_62 = arith.constant 0 : index
      %c0_63 = arith.constant 0 : index
      %c0_64 = arith.constant 0 : index
      %153 = vector.load %arg4[%c0_62, %c0_63, %c0_64] : memref<16x8x8xf32, #tpu.memory_space<vmem>>, vector<1x8x8xf32>
      %154 = vector.shape_cast %153 : vector<1x8x8xf32> to vector<8x8xf32>
      %155 = vector.broadcast %152 : vector<1x1xf32> to vector<8x8xf32>
      %156 = arith.mulf %155, %154 : vector<8x8xf32>
      %157 = vector.extract_strided_slice %151 {offsets = [1, 0], sizes = [1, 1], strides = [1, 1]} : vector<16x1xf32> to vector<1x1xf32>
      %c1_65 = arith.constant 1 : index
      %c0_66 = arith.constant 0 : index
      %c0_67 = arith.constant 0 : index
      %158 = vector.load %arg4[%c1_65, %c0_66, %c0_67] : memref<16x8x8xf32, #tpu.memory_space<vmem>>, vector<1x8x8xf32>
      %159 = vector.shape_cast %158 : vector<1x8x8xf32> to vector<8x8xf32>
      %160 = vector.broadcast %157 : vector<1x1xf32> to vector<8x8xf32>
      %161 = arith.mulf %160, %159 : vector<8x8xf32>
      %162 = vector.extract_strided_slice %151 {offsets = [2, 0], sizes = [1, 1], strides = [1, 1]} : vector<16x1xf32> to vector<1x1xf32>
      %c2_68 = arith.constant 2 : index
      %c0_69 = arith.constant 0 : index
      %c0_70 = arith.constant 0 : index
      %163 = vector.load %arg4[%c2_68, %c0_69, %c0_70] : memref<16x8x8xf32, #tpu.memory_space<vmem>>, vector<1x8x8xf32>
      %164 = vector.shape_cast %163 : vector<1x8x8xf32> to vector<8x8xf32>
      %165 = vector.broadcast %162 : vector<1x1xf32> to vector<8x8xf32>
      %166 = arith.mulf %165, %164 : vector<8x8xf32>
      %167 = vector.extract_strided_slice %151 {offsets = [3, 0], sizes = [1, 1], strides = [1, 1]} : vector<16x1xf32> to vector<1x1xf32>
      %c3_71 = arith.constant 3 : index
      %c0_72 = arith.constant 0 : index
      %c0_73 = arith.constant 0 : index
      %168 = vector.load %arg4[%c3_71, %c0_72, %c0_73] : memref<16x8x8xf32, #tpu.memory_space<vmem>>, vector<1x8x8xf32>
      %169 = vector.shape_cast %168 : vector<1x8x8xf32> to vector<8x8xf32>
      %170 = vector.broadcast %167 : vector<1x1xf32> to vector<8x8xf32>
      %171 = arith.mulf %170, %169 : vector<8x8xf32>
      %172 = vector.extract_strided_slice %151 {offsets = [4, 0], sizes = [1, 1], strides = [1, 1]} : vector<16x1xf32> to vector<1x1xf32>
      %c4_74 = arith.constant 4 : index
      %c0_75 = arith.constant 0 : index
      %c0_76 = arith.constant 0 : index
      %173 = vector.load %arg4[%c4_74, %c0_75, %c0_76] : memref<16x8x8xf32, #tpu.memory_space<vmem>>, vector<1x8x8xf32>
      %174 = vector.shape_cast %173 : vector<1x8x8xf32> to vector<8x8xf32>
      %175 = vector.broadcast %172 : vector<1x1xf32> to vector<8x8xf32>
      %176 = arith.mulf %175, %174 : vector<8x8xf32>
      %177 = vector.extract_strided_slice %151 {offsets = [5, 0], sizes = [1, 1], strides = [1, 1]} : vector<16x1xf32> to vector<1x1xf32>
      %c5_77 = arith.constant 5 : index
      %c0_78 = arith.constant 0 : index
      %c0_79 = arith.constant 0 : index
      %178 = vector.load %arg4[%c5_77, %c0_78, %c0_79] : memref<16x8x8xf32, #tpu.memory_space<vmem>>, vector<1x8x8xf32>
      %179 = vector.shape_cast %178 : vector<1x8x8xf32> to vector<8x8xf32>
      %180 = vector.broadcast %177 : vector<1x1xf32> to vector<8x8xf32>
      %181 = arith.mulf %180, %179 : vector<8x8xf32>
      %182 = vector.extract_strided_slice %151 {offsets = [6, 0], sizes = [1, 1], strides = [1, 1]} : vector<16x1xf32> to vector<1x1xf32>
      %c6_80 = arith.constant 6 : index
      %c0_81 = arith.constant 0 : index
      %c0_82 = arith.constant 0 : index
      %183 = vector.load %arg4[%c6_80, %c0_81, %c0_82] : memref<16x8x8xf32, #tpu.memory_space<vmem>>, vector<1x8x8xf32>
      %184 = vector.shape_cast %183 : vector<1x8x8xf32> to vector<8x8xf32>
      %185 = vector.broadcast %182 : vector<1x1xf32> to vector<8x8xf32>
      %186 = arith.mulf %185, %184 : vector<8x8xf32>
      %187 = vector.extract_strided_slice %151 {offsets = [7, 0], sizes = [1, 1], strides = [1, 1]} : vector<16x1xf32> to vector<1x1xf32>
      %c7_83 = arith.constant 7 : index
      %c0_84 = arith.constant 0 : index
      %c0_85 = arith.constant 0 : index
      %188 = vector.load %arg4[%c7_83, %c0_84, %c0_85] : memref<16x8x8xf32, #tpu.memory_space<vmem>>, vector<1x8x8xf32>
      %189 = vector.shape_cast %188 : vector<1x8x8xf32> to vector<8x8xf32>
      %190 = vector.broadcast %187 : vector<1x1xf32> to vector<8x8xf32>
      %191 = arith.mulf %190, %189 : vector<8x8xf32>
      %192 = vector.extract_strided_slice %151 {offsets = [8, 0], sizes = [1, 1], strides = [1, 1]} : vector<16x1xf32> to vector<1x1xf32>
      %c8_86 = arith.constant 8 : index
      %c0_87 = arith.constant 0 : index
      %c0_88 = arith.constant 0 : index
      %193 = vector.load %arg4[%c8_86, %c0_87, %c0_88] : memref<16x8x8xf32, #tpu.memory_space<vmem>>, vector<1x8x8xf32>
      %194 = vector.shape_cast %193 : vector<1x8x8xf32> to vector<8x8xf32>
      %195 = vector.broadcast %192 : vector<1x1xf32> to vector<8x8xf32>
      %196 = arith.mulf %195, %194 : vector<8x8xf32>
      %197 = vector.extract_strided_slice %151 {offsets = [9, 0], sizes = [1, 1], strides = [1, 1]} : vector<16x1xf32> to vector<1x1xf32>
      %c9_89 = arith.constant 9 : index
      %c0_90 = arith.constant 0 : index
      %c0_91 = arith.constant 0 : index
      %198 = vector.load %arg4[%c9_89, %c0_90, %c0_91] : memref<16x8x8xf32, #tpu.memory_space<vmem>>, vector<1x8x8xf32>
      %199 = vector.shape_cast %198 : vector<1x8x8xf32> to vector<8x8xf32>
      %200 = vector.broadcast %197 : vector<1x1xf32> to vector<8x8xf32>
      %201 = arith.mulf %200, %199 : vector<8x8xf32>
      %202 = vector.extract_strided_slice %151 {offsets = [10, 0], sizes = [1, 1], strides = [1, 1]} : vector<16x1xf32> to vector<1x1xf32>
      %c10_92 = arith.constant 10 : index
      %c0_93 = arith.constant 0 : index
      %c0_94 = arith.constant 0 : index
      %203 = vector.load %arg4[%c10_92, %c0_93, %c0_94] : memref<16x8x8xf32, #tpu.memory_space<vmem>>, vector<1x8x8xf32>
      %204 = vector.shape_cast %203 : vector<1x8x8xf32> to vector<8x8xf32>
      %205 = vector.broadcast %202 : vector<1x1xf32> to vector<8x8xf32>
      %206 = arith.mulf %205, %204 : vector<8x8xf32>
      %207 = vector.extract_strided_slice %151 {offsets = [11, 0], sizes = [1, 1], strides = [1, 1]} : vector<16x1xf32> to vector<1x1xf32>
      %c11_95 = arith.constant 11 : index
      %c0_96 = arith.constant 0 : index
      %c0_97 = arith.constant 0 : index
      %208 = vector.load %arg4[%c11_95, %c0_96, %c0_97] : memref<16x8x8xf32, #tpu.memory_space<vmem>>, vector<1x8x8xf32>
      %209 = vector.shape_cast %208 : vector<1x8x8xf32> to vector<8x8xf32>
      %210 = vector.broadcast %207 : vector<1x1xf32> to vector<8x8xf32>
      %211 = arith.mulf %210, %209 : vector<8x8xf32>
      %212 = vector.extract_strided_slice %151 {offsets = [12, 0], sizes = [1, 1], strides = [1, 1]} : vector<16x1xf32> to vector<1x1xf32>
      %c12_98 = arith.constant 12 : index
      %c0_99 = arith.constant 0 : index
      %c0_100 = arith.constant 0 : index
      %213 = vector.load %arg4[%c12_98, %c0_99, %c0_100] : memref<16x8x8xf32, #tpu.memory_space<vmem>>, vector<1x8x8xf32>
      %214 = vector.shape_cast %213 : vector<1x8x8xf32> to vector<8x8xf32>
      %215 = vector.broadcast %212 : vector<1x1xf32> to vector<8x8xf32>
      %216 = arith.mulf %215, %214 : vector<8x8xf32>
      %217 = vector.extract_strided_slice %151 {offsets = [13, 0], sizes = [1, 1], strides = [1, 1]} : vector<16x1xf32> to vector<1x1xf32>
      %c13_101 = arith.constant 13 : index
      %c0_102 = arith.constant 0 : index
      %c0_103 = arith.constant 0 : index
      %218 = vector.load %arg4[%c13_101, %c0_102, %c0_103] : memref<16x8x8xf32, #tpu.memory_space<vmem>>, vector<1x8x8xf32>
      %219 = vector.shape_cast %218 : vector<1x8x8xf32> to vector<8x8xf32>
      %220 = vector.broadcast %217 : vector<1x1xf32> to vector<8x8xf32>
      %221 = arith.mulf %220, %219 : vector<8x8xf32>
      %222 = vector.extract_strided_slice %151 {offsets = [14, 0], sizes = [1, 1], strides = [1, 1]} : vector<16x1xf32> to vector<1x1xf32>
      %c14_104 = arith.constant 14 : index
      %c0_105 = arith.constant 0 : index
      %c0_106 = arith.constant 0 : index
      %223 = vector.load %arg4[%c14_104, %c0_105, %c0_106] : memref<16x8x8xf32, #tpu.memory_space<vmem>>, vector<1x8x8xf32>
      %224 = vector.shape_cast %223 : vector<1x8x8xf32> to vector<8x8xf32>
      %225 = vector.broadcast %222 : vector<1x1xf32> to vector<8x8xf32>
      %226 = arith.mulf %225, %224 : vector<8x8xf32>
      %227 = vector.extract_strided_slice %151 {offsets = [15, 0], sizes = [1, 1], strides = [1, 1]} : vector<16x1xf32> to vector<1x1xf32>
      %c15_107 = arith.constant 15 : index
      %c0_108 = arith.constant 0 : index
      %c0_109 = arith.constant 0 : index
      %228 = vector.load %arg4[%c15_107, %c0_108, %c0_109] : memref<16x8x8xf32, #tpu.memory_space<vmem>>, vector<1x8x8xf32>
      %229 = vector.shape_cast %228 : vector<1x8x8xf32> to vector<8x8xf32>
      %230 = vector.broadcast %227 : vector<1x1xf32> to vector<8x8xf32>
      %231 = arith.mulf %230, %229 : vector<8x8xf32>
      %232 = arith.addf %156, %161 : vector<8x8xf32>
      %233 = arith.addf %166, %171 : vector<8x8xf32>
      %234 = arith.addf %176, %181 : vector<8x8xf32>
      %235 = arith.addf %186, %191 : vector<8x8xf32>
      %236 = arith.addf %196, %201 : vector<8x8xf32>
      %237 = arith.addf %206, %211 : vector<8x8xf32>
      %238 = arith.addf %216, %221 : vector<8x8xf32>
      %239 = arith.addf %226, %231 : vector<8x8xf32>
      %240 = arith.addf %232, %233 : vector<8x8xf32>
      %241 = arith.addf %234, %235 : vector<8x8xf32>
      %242 = arith.addf %236, %237 : vector<8x8xf32>
      %243 = arith.addf %238, %239 : vector<8x8xf32>
      %244 = arith.addf %240, %241 : vector<8x8xf32>
      %245 = arith.addf %242, %243 : vector<8x8xf32>
      %246 = arith.addf %244, %245 : vector<8x8xf32>
      %cst_110 = arith.constant dense<0.000000e+00> : vector<8x256xf32>
      %247 = tpu.matmul %246, %140, %cst_110 {dimension_numbers = #tpu.dot_dimension_numbers<[1], [0], [0], [1], [0, 0, 1, 1], [], []>} : vector<8x8xf32>, vector<8x256xf32>, vector<8x256xf32> -> vector<8x256xf32>
      %248 = arith.addi %0, %c1_i32_53 : i32
      %249 = arith.index_cast %248 : i32 to index
      %c0_111 = arith.constant 0 : index
      %c0_112 = arith.constant 0 : index
      %250 = vector.load %arg8[%249, %c0_111, %c0_112] : memref<4x8x256xf32, #tpu.memory_space<vmem>>, vector<1x8x256xf32>
      %251 = vector.shape_cast %250 : vector<1x8x256xf32> to vector<8x256xf32>
      %252 = vector.shape_cast %247 : vector<8x256xf32> to vector<1x8x256xf32>
      tpu.vector_store %arg8[%249, %c0_111, %c0_112], %252 {strides = array<i32>} : memref<4x8x256xf32, #tpu.memory_space<vmem>>, vector<1x8x256xf32>,
      %cst_113 = arith.constant dense<0.000000e+00> : vector<8xf32>
      %253 = vector.multi_reduction <add>, %247, %cst_113 [1] : vector<8x256xf32> to vector<8xf32>
      %254 = vector.shape_cast %253 : vector<8xf32> to vector<8x1xf32>
      %255 = arith.mulf %247, %247 : vector<8x256xf32>
      %cst_114 = arith.constant dense<0.000000e+00> : vector<8xf32>
      %256 = vector.multi_reduction <add>, %255, %cst_114 [1] : vector<8x256xf32> to vector<8xf32>
      %257 = vector.shape_cast %256 : vector<8xf32> to vector<8x1xf32>
      %258 = tpu.concatenate %254, %257 in 1 : vector<8x1xf32>, vector<8x1xf32> -> vector<8x2xf32>
      %259 = arith.addf %137, %258 : vector<8x2xf32>
      %c2_i32_115 = arith.constant 2 : i32
      %c0_116 = arith.constant 0 : index
      %c0_117 = arith.constant 0 : index
      %260 = vector.load %arg9[%c0_116, %c0_117] : memref<8x8xf32, #tpu.memory_space<vmem>>, vector<8x2xf32>
      %261 = arith.addf %260, %259 : vector<8x2xf32>
      %c0_118 = arith.constant 0 : index
      %c0_119 = arith.constant 0 : index
      %262 = vector.load %arg9[%c0_118, %c0_119] : memref<8x8xf32, #tpu.memory_space<vmem>>, vector<8x2xf32>
      tpu.vector_store %arg9[%c0_118, %c0_119], %261 {strides = array<i32>} : memref<8x8xf32, #tpu.memory_space<vmem>>, vector<8x2xf32>,
    } else {
    }
    %c1_i32 = arith.constant 1 : i32
    %9 = arith.cmpi eq, %arg0, %c1_i32 : i32
    %10 = arith.extui %9 : i1 to i32
    %c0_i32_4 = arith.constant 0 : i32
    %11 = arith.cmpi ne, %10, %c0_i32_4 : i32
    scf.if %11 {
      %c0_i32_7 = arith.constant 0 : i32
      %15 = arith.cmpi eq, %arg1, %c0_i32_7 : i32
      %16 = arith.extui %15 : i1 to i32
      %c0_i32_8 = arith.constant 0 : i32
      %17 = arith.cmpi ne, %16, %c0_i32_8 : i32
      scf.if %17 {
        %c0_128 = arith.constant 0 : index
        %c0_129 = arith.constant 0 : index
        %280 = vector.load %arg9[%c0_128, %c0_129] : memref<8x8xf32, #tpu.memory_space<vmem>>, vector<8x1xf32>
        %cst_130 = arith.constant 9.765625E-4 : f32
        %281 = vector.broadcast %cst_130 : f32 to vector<8x1xf32>
        %282 = arith.mulf %280, %281 : vector<8x1xf32>
        %c0_131 = arith.constant 0 : index
        %c1_132 = arith.constant 1 : index
        %283 = vector.load %arg9[%c0_131, %c1_132] : memref<8x8xf32, #tpu.memory_space<vmem>>, vector<8x1xf32>
        %cst_133 = arith.constant 9.765625E-4 : f32
        %284 = vector.broadcast %cst_133 : f32 to vector<8x1xf32>
        %285 = arith.mulf %283, %284 : vector<8x1xf32>
        %286 = arith.mulf %282, %282 : vector<8x1xf32>
        %287 = arith.subf %285, %286 : vector<8x1xf32>
        %cst_134 = arith.constant 9.99999974E-6 : f32
        %288 = vector.broadcast %cst_134 : f32 to vector<8x1xf32>
        %289 = arith.addf %287, %288 : vector<8x1xf32>
        %290 = math.rsqrt %289 : vector<8x1xf32>
        %c0_135 = arith.constant 0 : index
        %c0_136 = arith.constant 0 : index
        %291 = vector.load %arg7[%c0_135, %c0_136] : memref<8x4xf32, #tpu.memory_space<vmem>>, vector<8x1xf32>
        %292 = arith.mulf %290, %291 : vector<8x1xf32>
        %c0_137 = arith.constant 0 : index
        %c1_138 = arith.constant 1 : index
        %293 = vector.load %arg7[%c0_137, %c1_138] : memref<8x4xf32, #tpu.memory_space<vmem>>, vector<8x1xf32>
        %294 = arith.mulf %282, %292 : vector<8x1xf32>
        %295 = arith.subf %293, %294 : vector<8x1xf32>
        %296 = tpu.concatenate %292, %295 in 1 : vector<8x1xf32>, vector<8x1xf32> -> vector<8x2xf32>
        %c0_139 = arith.constant 0 : index
        %c4_140 = arith.constant 4 : index
        %297 = vector.load %arg9[%c0_139, %c4_140] : memref<8x8xf32, #tpu.memory_space<vmem>>, vector<8x2xf32>
        tpu.vector_store %arg9[%c0_139, %c4_140], %296 {strides = array<i32>} : memref<8x8xf32, #tpu.memory_space<vmem>>, vector<8x2xf32>,
      } else {
      }
      %c0 = arith.constant 0 : index
      %c4 = arith.constant 4 : index
      %18 = vector.load %arg9[%c0, %c4] : memref<8x8xf32, #tpu.memory_space<vmem>>, vector<8x1xf32>
      %c0_9 = arith.constant 0 : index
      %c5 = arith.constant 5 : index
      %19 = vector.load %arg9[%c0_9, %c5] : memref<8x8xf32, #tpu.memory_space<vmem>>, vector<8x1xf32>
      %cst = arith.constant 0.000000e+00 : f32
      %20 = vector.broadcast %cst : f32 to vector<8x2xf32>
      %c0_i32_10 = arith.constant 0 : i32
      %21 = arith.addi %0, %c0_i32_10 : i32
      %22 = arith.index_cast %21 : i32 to index
      %c0_11 = arith.constant 0 : index
      %c0_12 = arith.constant 0 : index
      %23 = vector.load %arg8[%22, %c0_11, %c0_12] : memref<4x8x256xf32, #tpu.memory_space<vmem>>, vector<1x8x256xf32>
      %24 = vector.shape_cast %23 : vector<1x8x256xf32> to vector<8x256xf32>
      %25 = vector.broadcast %18 : vector<8x1xf32> to vector<8x256xf32>
      %26 = arith.mulf %24, %25 : vector<8x256xf32>
      %27 = vector.broadcast %19 : vector<8x1xf32> to vector<8x256xf32>
      %28 = arith.addf %26, %27 : vector<8x256xf32>
      %cst_13 = arith.constant 0.000000e+00 : f32
      %29 = vector.broadcast %cst_13 : f32 to vector<8x256xf32>
      %30 = arith.maximumf %28, %29 : vector<8x256xf32>
      %cst_14 = arith.constant dense<0.000000e+00> : vector<8xf32>
      %31 = vector.multi_reduction <add>, %30, %cst_14 [1] : vector<8x256xf32> to vector<8xf32>
      %32 = vector.shape_cast %31 : vector<8xf32> to vector<8x1xf32>
      %cst_15 = arith.constant 2.560000e+02 : f32
      %33 = vector.broadcast %cst_15 : f32 to vector<8x1xf32>
      %34 = arith.divf %32, %33 : vector<8x1xf32>
      %c0_16 = arith.constant 0 : index
      %c0_17 = arith.constant 0 : index
      %35 = vector.load %arg5[%c0_16, %c0_17] : memref<16x8xf32, #tpu.memory_space<vmem>>, vector<16x8xf32>
      %cst_18 = arith.constant dense<0.000000e+00> : vector<16x1xf32>
      %36 = tpu.matmul %35, %34, %cst_18 {dimension_numbers = #tpu.dot_dimension_numbers<[1], [0], [0], [1], [0, 0, 1, 1], [], []>} : vector<16x8xf32>, vector<8x1xf32>, vector<16x1xf32> -> vector<16x1xf32>
      %37 = arith.negf %36 : vector<16x1xf32>
      %38 = math.exp %37 : vector<16x1xf32>
      %cst_19 = arith.constant 1.000000e+00 : f32
      %39 = vector.broadcast %cst_19 : f32 to vector<16x1xf32>
      %40 = arith.addf %39, %38 : vector<16x1xf32>
      %41 = arith.divf %39, %40 : vector<16x1xf32>
      %42 = vector.extract_strided_slice %41 {offsets = [0, 0], sizes = [1, 1], strides = [1, 1]} : vector<16x1xf32> to vector<1x1xf32>
      %c0_20 = arith.constant 0 : index
      %c0_21 = arith.constant 0 : index
      %c0_22 = arith.constant 0 : index
      %43 = vector.load %arg6[%c0_20, %c0_21, %c0_22] : memref<16x8x8xf32, #tpu.memory_space<vmem>>, vector<1x8x8xf32>
      %44 = vector.shape_cast %43 : vector<1x8x8xf32> to vector<8x8xf32>
      %45 = vector.broadcast %42 : vector<1x1xf32> to vector<8x8xf32>
      %46 = arith.mulf %45, %44 : vector<8x8xf32>
      %47 = vector.extract_strided_slice %41 {offsets = [1, 0], sizes = [1, 1], strides = [1, 1]} : vector<16x1xf32> to vector<1x1xf32>
      %c1 = arith.constant 1 : index
      %c0_23 = arith.constant 0 : index
      %c0_24 = arith.constant 0 : index
      %48 = vector.load %arg6[%c1, %c0_23, %c0_24] : memref<16x8x8xf32, #tpu.memory_space<vmem>>, vector<1x8x8xf32>
      %49 = vector.shape_cast %48 : vector<1x8x8xf32> to vector<8x8xf32>
      %50 = vector.broadcast %47 : vector<1x1xf32> to vector<8x8xf32>
      %51 = arith.mulf %50, %49 : vector<8x8xf32>
      %52 = vector.extract_strided_slice %41 {offsets = [2, 0], sizes = [1, 1], strides = [1, 1]} : vector<16x1xf32> to vector<1x1xf32>
      %c2 = arith.constant 2 : index
      %c0_25 = arith.constant 0 : index
      %c0_26 = arith.constant 0 : index
      %53 = vector.load %arg6[%c2, %c0_25, %c0_26] : memref<16x8x8xf32, #tpu.memory_space<vmem>>, vector<1x8x8xf32>
      %54 = vector.shape_cast %53 : vector<1x8x8xf32> to vector<8x8xf32>
      %55 = vector.broadcast %52 : vector<1x1xf32> to vector<8x8xf32>
      %56 = arith.mulf %55, %54 : vector<8x8xf32>
      %57 = vector.extract_strided_slice %41 {offsets = [3, 0], sizes = [1, 1], strides = [1, 1]} : vector<16x1xf32> to vector<1x1xf32>
      %c3 = arith.constant 3 : index
      %c0_27 = arith.constant 0 : index
      %c0_28 = arith.constant 0 : index
      %58 = vector.load %arg6[%c3, %c0_27, %c0_28] : memref<16x8x8xf32, #tpu.memory_space<vmem>>, vector<1x8x8xf32>
      %59 = vector.shape_cast %58 : vector<1x8x8xf32> to vector<8x8xf32>
      %60 = vector.broadcast %57 : vector<1x1xf32> to vector<8x8xf32>
      %61 = arith.mulf %60, %59 : vector<8x8xf32>
      %62 = vector.extract_strided_slice %41 {offsets = [4, 0], sizes = [1, 1], strides = [1, 1]} : vector<16x1xf32> to vector<1x1xf32>
      %c4_29 = arith.constant 4 : index
      %c0_30 = arith.constant 0 : index
      %c0_31 = arith.constant 0 : index
      %63 = vector.load %arg6[%c4_29, %c0_30, %c0_31] : memref<16x8x8xf32, #tpu.memory_space<vmem>>, vector<1x8x8xf32>
      %64 = vector.shape_cast %63 : vector<1x8x8xf32> to vector<8x8xf32>
      %65 = vector.broadcast %62 : vector<1x1xf32> to vector<8x8xf32>
      %66 = arith.mulf %65, %64 : vector<8x8xf32>
      %67 = vector.extract_strided_slice %41 {offsets = [5, 0], sizes = [1, 1], strides = [1, 1]} : vector<16x1xf32> to vector<1x1xf32>
      %c5_32 = arith.constant 5 : index
      %c0_33 = arith.constant 0 : index
      %c0_34 = arith.constant 0 : index
      %68 = vector.load %arg6[%c5_32, %c0_33, %c0_34] : memref<16x8x8xf32, #tpu.memory_space<vmem>>, vector<1x8x8xf32>
      %69 = vector.shape_cast %68 : vector<1x8x8xf32> to vector<8x8xf32>
      %70 = vector.broadcast %67 : vector<1x1xf32> to vector<8x8xf32>
      %71 = arith.mulf %70, %69 : vector<8x8xf32>
      %72 = vector.extract_strided_slice %41 {offsets = [6, 0], sizes = [1, 1], strides = [1, 1]} : vector<16x1xf32> to vector<1x1xf32>
      %c6 = arith.constant 6 : index
      %c0_35 = arith.constant 0 : index
      %c0_36 = arith.constant 0 : index
      %73 = vector.load %arg6[%c6, %c0_35, %c0_36] : memref<16x8x8xf32, #tpu.memory_space<vmem>>, vector<1x8x8xf32>
      %74 = vector.shape_cast %73 : vector<1x8x8xf32> to vector<8x8xf32>
      %75 = vector.broadcast %72 : vector<1x1xf32> to vector<8x8xf32>
      %76 = arith.mulf %75, %74 : vector<8x8xf32>
      %77 = vector.extract_strided_slice %41 {offsets = [7, 0], sizes = [1, 1], strides = [1, 1]} : vector<16x1xf32> to vector<1x1xf32>
      %c7 = arith.constant 7 : index
      %c0_37 = arith.constant 0 : index
      %c0_38 = arith.constant 0 : index
      %78 = vector.load %arg6[%c7, %c0_37, %c0_38] : memref<16x8x8xf32, #tpu.memory_space<vmem>>, vector<1x8x8xf32>
      %79 = vector.shape_cast %78 : vector<1x8x8xf32> to vector<8x8xf32>
      %80 = vector.broadcast %77 : vector<1x1xf32> to vector<8x8xf32>
      %81 = arith.mulf %80, %79 : vector<8x8xf32>
      %82 = vector.extract_strided_slice %41 {offsets = [8, 0], sizes = [1, 1], strides = [1, 1]} : vector<16x1xf32> to vector<1x1xf32>
      %c8 = arith.constant 8 : index
      %c0_39 = arith.constant 0 : index
      %c0_40 = arith.constant 0 : index
      %83 = vector.load %arg6[%c8, %c0_39, %c0_40] : memref<16x8x8xf32, #tpu.memory_space<vmem>>, vector<1x8x8xf32>
      %84 = vector.shape_cast %83 : vector<1x8x8xf32> to vector<8x8xf32>
      %85 = vector.broadcast %82 : vector<1x1xf32> to vector<8x8xf32>
      %86 = arith.mulf %85, %84 : vector<8x8xf32>
      %87 = vector.extract_strided_slice %41 {offsets = [9, 0], sizes = [1, 1], strides = [1, 1]} : vector<16x1xf32> to vector<1x1xf32>
      %c9 = arith.constant 9 : index
      %c0_41 = arith.constant 0 : index
      %c0_42 = arith.constant 0 : index
      %88 = vector.load %arg6[%c9, %c0_41, %c0_42] : memref<16x8x8xf32, #tpu.memory_space<vmem>>, vector<1x8x8xf32>
      %89 = vector.shape_cast %88 : vector<1x8x8xf32> to vector<8x8xf32>
      %90 = vector.broadcast %87 : vector<1x1xf32> to vector<8x8xf32>
      %91 = arith.mulf %90, %89 : vector<8x8xf32>
      %92 = vector.extract_strided_slice %41 {offsets = [10, 0], sizes = [1, 1], strides = [1, 1]} : vector<16x1xf32> to vector<1x1xf32>
      %c10 = arith.constant 10 : index
      %c0_43 = arith.constant 0 : index
      %c0_44 = arith.constant 0 : index
      %93 = vector.load %arg6[%c10, %c0_43, %c0_44] : memref<16x8x8xf32, #tpu.memory_space<vmem>>, vector<1x8x8xf32>
      %94 = vector.shape_cast %93 : vector<1x8x8xf32> to vector<8x8xf32>
      %95 = vector.broadcast %92 : vector<1x1xf32> to vector<8x8xf32>
      %96 = arith.mulf %95, %94 : vector<8x8xf32>
      %97 = vector.extract_strided_slice %41 {offsets = [11, 0], sizes = [1, 1], strides = [1, 1]} : vector<16x1xf32> to vector<1x1xf32>
      %c11 = arith.constant 11 : index
      %c0_45 = arith.constant 0 : index
      %c0_46 = arith.constant 0 : index
      %98 = vector.load %arg6[%c11, %c0_45, %c0_46] : memref<16x8x8xf32, #tpu.memory_space<vmem>>, vector<1x8x8xf32>
      %99 = vector.shape_cast %98 : vector<1x8x8xf32> to vector<8x8xf32>
      %100 = vector.broadcast %97 : vector<1x1xf32> to vector<8x8xf32>
      %101 = arith.mulf %100, %99 : vector<8x8xf32>
      %102 = vector.extract_strided_slice %41 {offsets = [12, 0], sizes = [1, 1], strides = [1, 1]} : vector<16x1xf32> to vector<1x1xf32>
      %c12 = arith.constant 12 : index
      %c0_47 = arith.constant 0 : index
      %c0_48 = arith.constant 0 : index
      %103 = vector.load %arg6[%c12, %c0_47, %c0_48] : memref<16x8x8xf32, #tpu.memory_space<vmem>>, vector<1x8x8xf32>
      %104 = vector.shape_cast %103 : vector<1x8x8xf32> to vector<8x8xf32>
      %105 = vector.broadcast %102 : vector<1x1xf32> to vector<8x8xf32>
      %106 = arith.mulf %105, %104 : vector<8x8xf32>
      %107 = vector.extract_strided_slice %41 {offsets = [13, 0], sizes = [1, 1], strides = [1, 1]} : vector<16x1xf32> to vector<1x1xf32>
      %c13 = arith.constant 13 : index
      %c0_49 = arith.constant 0 : index
      %c0_50 = arith.constant 0 : index
      %108 = vector.load %arg6[%c13, %c0_49, %c0_50] : memref<16x8x8xf32, #tpu.memory_space<vmem>>, vector<1x8x8xf32>
      %109 = vector.shape_cast %108 : vector<1x8x8xf32> to vector<8x8xf32>
      %110 = vector.broadcast %107 : vector<1x1xf32> to vector<8x8xf32>
      %111 = arith.mulf %110, %109 : vector<8x8xf32>
      %112 = vector.extract_strided_slice %41 {offsets = [14, 0], sizes = [1, 1], strides = [1, 1]} : vector<16x1xf32> to vector<1x1xf32>
      %c14 = arith.constant 14 : index
      %c0_51 = arith.constant 0 : index
      %c0_52 = arith.constant 0 : index
      %113 = vector.load %arg6[%c14, %c0_51, %c0_52] : memref<16x8x8xf32, #tpu.memory_space<vmem>>, vector<1x8x8xf32>
      %114 = vector.shape_cast %113 : vector<1x8x8xf32> to vector<8x8xf32>
      %115 = vector.broadcast %112 : vector<1x1xf32> to vector<8x8xf32>
      %116 = arith.mulf %115, %114 : vector<8x8xf32>
      %117 = vector.extract_strided_slice %41 {offsets = [15, 0], sizes = [1, 1], strides = [1, 1]} : vector<16x1xf32> to vector<1x1xf32>
      %c15 = arith.constant 15 : index
      %c0_53 = arith.constant 0 : index
      %c0_54 = arith.constant 0 : index
      %118 = vector.load %arg6[%c15, %c0_53, %c0_54] : memref<16x8x8xf32, #tpu.memory_space<vmem>>, vector<1x8x8xf32>
      %119 = vector.shape_cast %118 : vector<1x8x8xf32> to vector<8x8xf32>
      %120 = vector.broadcast %117 : vector<1x1xf32> to vector<8x8xf32>
      %121 = arith.mulf %120, %119 : vector<8x8xf32>
      %122 = arith.addf %46, %51 : vector<8x8xf32>
      %123 = arith.addf %56, %61 : vector<8x8xf32>
      %124 = arith.addf %66, %71 : vector<8x8xf32>
      %125 = arith.addf %76, %81 : vector<8x8xf32>
      %126 = arith.addf %86, %91 : vector<8x8xf32>
      %127 = arith.addf %96, %101 : vector<8x8xf32>
      %128 = arith.addf %106, %111 : vector<8x8xf32>
      %129 = arith.addf %116, %121 : vector<8x8xf32>
      %130 = arith.addf %122, %123 : vector<8x8xf32>
      %131 = arith.addf %124, %125 : vector<8x8xf32>
      %132 = arith.addf %126, %127 : vector<8x8xf32>
      %133 = arith.addf %128, %129 : vector<8x8xf32>
      %134 = arith.addf %130, %131 : vector<8x8xf32>
      %135 = arith.addf %132, %133 : vector<8x8xf32>
      %136 = arith.addf %134, %135 : vector<8x8xf32>
      %cst_55 = arith.constant dense<0.000000e+00> : vector<8x256xf32>
      %137 = tpu.matmul %136, %30, %cst_55 {dimension_numbers = #tpu.dot_dimension_numbers<[1], [0], [0], [1], [0, 0, 1, 1], [], []>} : vector<8x8xf32>, vector<8x256xf32>, vector<8x256xf32> -> vector<8x256xf32>
      %138 = arith.index_cast %21 : i32 to index
      %c0_56 = arith.constant 0 : index
      %c0_57 = arith.constant 0 : index
      %139 = vector.load %arg8[%138, %c0_56, %c0_57] : memref<4x8x256xf32, #tpu.memory_space<vmem>>, vector<1x8x256xf32>
      %140 = vector.shape_cast %139 : vector<1x8x256xf32> to vector<8x256xf32>
      %141 = vector.shape_cast %137 : vector<8x256xf32> to vector<1x8x256xf32>
      tpu.vector_store %arg8[%138, %c0_56, %c0_57], %141 {strides = array<i32>} : memref<4x8x256xf32, #tpu.memory_space<vmem>>, vector<1x8x256xf32>,
      %cst_58 = arith.constant dense<0.000000e+00> : vector<8xf32>
      %142 = vector.multi_reduction <add>, %137, %cst_58 [1] : vector<8x256xf32> to vector<8xf32>
      %143 = vector.shape_cast %142 : vector<8xf32> to vector<8x1xf32>
      %144 = arith.mulf %137, %137 : vector<8x256xf32>
      %cst_59 = arith.constant dense<0.000000e+00> : vector<8xf32>
      %145 = vector.multi_reduction <add>, %144, %cst_59 [1] : vector<8x256xf32> to vector<8xf32>
      %146 = vector.shape_cast %145 : vector<8xf32> to vector<8x1xf32>
      %147 = tpu.concatenate %143, %146 in 1 : vector<8x1xf32>, vector<8x1xf32> -> vector<8x2xf32>
      %148 = arith.addf %20, %147 : vector<8x2xf32>
      %c1_i32_60 = arith.constant 1 : i32
      %149 = arith.addi %0, %c1_i32_60 : i32
      %150 = arith.index_cast %149 : i32 to index
      %c0_61 = arith.constant 0 : index
      %c0_62 = arith.constant 0 : index
      %151 = vector.load %arg8[%150, %c0_61, %c0_62] : memref<4x8x256xf32, #tpu.memory_space<vmem>>, vector<1x8x256xf32>
      %152 = vector.shape_cast %151 : vector<1x8x256xf32> to vector<8x256xf32>
      %153 = vector.broadcast %18 : vector<8x1xf32> to vector<8x256xf32>
      %154 = arith.mulf %152, %153 : vector<8x256xf32>
      %155 = vector.broadcast %19 : vector<8x1xf32> to vector<8x256xf32>
      %156 = arith.addf %154, %155 : vector<8x256xf32>
      %cst_63 = arith.constant 0.000000e+00 : f32
      %157 = vector.broadcast %cst_63 : f32 to vector<8x256xf32>
      %158 = arith.maximumf %156, %157 : vector<8x256xf32>
      %cst_64 = arith.constant dense<0.000000e+00> : vector<8xf32>
      %159 = vector.multi_reduction <add>, %158, %cst_64 [1] : vector<8x256xf32> to vector<8xf32>
      %160 = vector.shape_cast %159 : vector<8xf32> to vector<8x1xf32>
      %cst_65 = arith.constant 2.560000e+02 : f32
      %161 = vector.broadcast %cst_65 : f32 to vector<8x1xf32>
      %162 = arith.divf %160, %161 : vector<8x1xf32>
      %c0_66 = arith.constant 0 : index
      %c0_67 = arith.constant 0 : index
      %163 = vector.load %arg5[%c0_66, %c0_67] : memref<16x8xf32, #tpu.memory_space<vmem>>, vector<16x8xf32>
      %cst_68 = arith.constant dense<0.000000e+00> : vector<16x1xf32>
      %164 = tpu.matmul %163, %162, %cst_68 {dimension_numbers = #tpu.dot_dimension_numbers<[1], [0], [0], [1], [0, 0, 1, 1], [], []>} : vector<16x8xf32>, vector<8x1xf32>, vector<16x1xf32> -> vector<16x1xf32>
      %165 = arith.negf %164 : vector<16x1xf32>
      %166 = math.exp %165 : vector<16x1xf32>
      %cst_69 = arith.constant 1.000000e+00 : f32
      %167 = vector.broadcast %cst_69 : f32 to vector<16x1xf32>
      %168 = arith.addf %167, %166 : vector<16x1xf32>
      %169 = arith.divf %167, %168 : vector<16x1xf32>
      %170 = vector.extract_strided_slice %169 {offsets = [0, 0], sizes = [1, 1], strides = [1, 1]} : vector<16x1xf32> to vector<1x1xf32>
      %c0_70 = arith.constant 0 : index
      %c0_71 = arith.constant 0 : index
      %c0_72 = arith.constant 0 : index
      %171 = vector.load %arg6[%c0_70, %c0_71, %c0_72] : memref<16x8x8xf32, #tpu.memory_space<vmem>>, vector<1x8x8xf32>
      %172 = vector.shape_cast %171 : vector<1x8x8xf32> to vector<8x8xf32>
      %173 = vector.broadcast %170 : vector<1x1xf32> to vector<8x8xf32>
      %174 = arith.mulf %173, %172 : vector<8x8xf32>
      %175 = vector.extract_strided_slice %169 {offsets = [1, 0], sizes = [1, 1], strides = [1, 1]} : vector<16x1xf32> to vector<1x1xf32>
      %c1_73 = arith.constant 1 : index
      %c0_74 = arith.constant 0 : index
      %c0_75 = arith.constant 0 : index
      %176 = vector.load %arg6[%c1_73, %c0_74, %c0_75] : memref<16x8x8xf32, #tpu.memory_space<vmem>>, vector<1x8x8xf32>
      %177 = vector.shape_cast %176 : vector<1x8x8xf32> to vector<8x8xf32>
      %178 = vector.broadcast %175 : vector<1x1xf32> to vector<8x8xf32>
      %179 = arith.mulf %178, %177 : vector<8x8xf32>
      %180 = vector.extract_strided_slice %169 {offsets = [2, 0], sizes = [1, 1], strides = [1, 1]} : vector<16x1xf32> to vector<1x1xf32>
      %c2_76 = arith.constant 2 : index
      %c0_77 = arith.constant 0 : index
      %c0_78 = arith.constant 0 : index
      %181 = vector.load %arg6[%c2_76, %c0_77, %c0_78] : memref<16x8x8xf32, #tpu.memory_space<vmem>>, vector<1x8x8xf32>
      %182 = vector.shape_cast %181 : vector<1x8x8xf32> to vector<8x8xf32>
      %183 = vector.broadcast %180 : vector<1x1xf32> to vector<8x8xf32>
      %184 = arith.mulf %183, %182 : vector<8x8xf32>
      %185 = vector.extract_strided_slice %169 {offsets = [3, 0], sizes = [1, 1], strides = [1, 1]} : vector<16x1xf32> to vector<1x1xf32>
      %c3_79 = arith.constant 3 : index
      %c0_80 = arith.constant 0 : index
      %c0_81 = arith.constant 0 : index
      %186 = vector.load %arg6[%c3_79, %c0_80, %c0_81] : memref<16x8x8xf32, #tpu.memory_space<vmem>>, vector<1x8x8xf32>
      %187 = vector.shape_cast %186 : vector<1x8x8xf32> to vector<8x8xf32>
      %188 = vector.broadcast %185 : vector<1x1xf32> to vector<8x8xf32>
      %189 = arith.mulf %188, %187 : vector<8x8xf32>
      %190 = vector.extract_strided_slice %169 {offsets = [4, 0], sizes = [1, 1], strides = [1, 1]} : vector<16x1xf32> to vector<1x1xf32>
      %c4_82 = arith.constant 4 : index
      %c0_83 = arith.constant 0 : index
      %c0_84 = arith.constant 0 : index
      %191 = vector.load %arg6[%c4_82, %c0_83, %c0_84] : memref<16x8x8xf32, #tpu.memory_space<vmem>>, vector<1x8x8xf32>
      %192 = vector.shape_cast %191 : vector<1x8x8xf32> to vector<8x8xf32>
      %193 = vector.broadcast %190 : vector<1x1xf32> to vector<8x8xf32>
      %194 = arith.mulf %193, %192 : vector<8x8xf32>
      %195 = vector.extract_strided_slice %169 {offsets = [5, 0], sizes = [1, 1], strides = [1, 1]} : vector<16x1xf32> to vector<1x1xf32>
      %c5_85 = arith.constant 5 : index
      %c0_86 = arith.constant 0 : index
      %c0_87 = arith.constant 0 : index
      %196 = vector.load %arg6[%c5_85, %c0_86, %c0_87] : memref<16x8x8xf32, #tpu.memory_space<vmem>>, vector<1x8x8xf32>
      %197 = vector.shape_cast %196 : vector<1x8x8xf32> to vector<8x8xf32>
      %198 = vector.broadcast %195 : vector<1x1xf32> to vector<8x8xf32>
      %199 = arith.mulf %198, %197 : vector<8x8xf32>
      %200 = vector.extract_strided_slice %169 {offsets = [6, 0], sizes = [1, 1], strides = [1, 1]} : vector<16x1xf32> to vector<1x1xf32>
      %c6_88 = arith.constant 6 : index
      %c0_89 = arith.constant 0 : index
      %c0_90 = arith.constant 0 : index
      %201 = vector.load %arg6[%c6_88, %c0_89, %c0_90] : memref<16x8x8xf32, #tpu.memory_space<vmem>>, vector<1x8x8xf32>
      %202 = vector.shape_cast %201 : vector<1x8x8xf32> to vector<8x8xf32>
      %203 = vector.broadcast %200 : vector<1x1xf32> to vector<8x8xf32>
      %204 = arith.mulf %203, %202 : vector<8x8xf32>
      %205 = vector.extract_strided_slice %169 {offsets = [7, 0], sizes = [1, 1], strides = [1, 1]} : vector<16x1xf32> to vector<1x1xf32>
      %c7_91 = arith.constant 7 : index
      %c0_92 = arith.constant 0 : index
      %c0_93 = arith.constant 0 : index
      %206 = vector.load %arg6[%c7_91, %c0_92, %c0_93] : memref<16x8x8xf32, #tpu.memory_space<vmem>>, vector<1x8x8xf32>
      %207 = vector.shape_cast %206 : vector<1x8x8xf32> to vector<8x8xf32>
      %208 = vector.broadcast %205 : vector<1x1xf32> to vector<8x8xf32>
      %209 = arith.mulf %208, %207 : vector<8x8xf32>
      %210 = vector.extract_strided_slice %169 {offsets = [8, 0], sizes = [1, 1], strides = [1, 1]} : vector<16x1xf32> to vector<1x1xf32>
      %c8_94 = arith.constant 8 : index
      %c0_95 = arith.constant 0 : index
      %c0_96 = arith.constant 0 : index
      %211 = vector.load %arg6[%c8_94, %c0_95, %c0_96] : memref<16x8x8xf32, #tpu.memory_space<vmem>>, vector<1x8x8xf32>
      %212 = vector.shape_cast %211 : vector<1x8x8xf32> to vector<8x8xf32>
      %213 = vector.broadcast %210 : vector<1x1xf32> to vector<8x8xf32>
      %214 = arith.mulf %213, %212 : vector<8x8xf32>
      %215 = vector.extract_strided_slice %169 {offsets = [9, 0], sizes = [1, 1], strides = [1, 1]} : vector<16x1xf32> to vector<1x1xf32>
      %c9_97 = arith.constant 9 : index
      %c0_98 = arith.constant 0 : index
      %c0_99 = arith.constant 0 : index
      %216 = vector.load %arg6[%c9_97, %c0_98, %c0_99] : memref<16x8x8xf32, #tpu.memory_space<vmem>>, vector<1x8x8xf32>
      %217 = vector.shape_cast %216 : vector<1x8x8xf32> to vector<8x8xf32>
      %218 = vector.broadcast %215 : vector<1x1xf32> to vector<8x8xf32>
      %219 = arith.mulf %218, %217 : vector<8x8xf32>
      %220 = vector.extract_strided_slice %169 {offsets = [10, 0], sizes = [1, 1], strides = [1, 1]} : vector<16x1xf32> to vector<1x1xf32>
      %c10_100 = arith.constant 10 : index
      %c0_101 = arith.constant 0 : index
      %c0_102 = arith.constant 0 : index
      %221 = vector.load %arg6[%c10_100, %c0_101, %c0_102] : memref<16x8x8xf32, #tpu.memory_space<vmem>>, vector<1x8x8xf32>
      %222 = vector.shape_cast %221 : vector<1x8x8xf32> to vector<8x8xf32>
      %223 = vector.broadcast %220 : vector<1x1xf32> to vector<8x8xf32>
      %224 = arith.mulf %223, %222 : vector<8x8xf32>
      %225 = vector.extract_strided_slice %169 {offsets = [11, 0], sizes = [1, 1], strides = [1, 1]} : vector<16x1xf32> to vector<1x1xf32>
      %c11_103 = arith.constant 11 : index
      %c0_104 = arith.constant 0 : index
      %c0_105 = arith.constant 0 : index
      %226 = vector.load %arg6[%c11_103, %c0_104, %c0_105] : memref<16x8x8xf32, #tpu.memory_space<vmem>>, vector<1x8x8xf32>
      %227 = vector.shape_cast %226 : vector<1x8x8xf32> to vector<8x8xf32>
      %228 = vector.broadcast %225 : vector<1x1xf32> to vector<8x8xf32>
      %229 = arith.mulf %228, %227 : vector<8x8xf32>
      %230 = vector.extract_strided_slice %169 {offsets = [12, 0], sizes = [1, 1], strides = [1, 1]} : vector<16x1xf32> to vector<1x1xf32>
      %c12_106 = arith.constant 12 : index
      %c0_107 = arith.constant 0 : index
      %c0_108 = arith.constant 0 : index
      %231 = vector.load %arg6[%c12_106, %c0_107, %c0_108] : memref<16x8x8xf32, #tpu.memory_space<vmem>>, vector<1x8x8xf32>
      %232 = vector.shape_cast %231 : vector<1x8x8xf32> to vector<8x8xf32>
      %233 = vector.broadcast %230 : vector<1x1xf32> to vector<8x8xf32>
      %234 = arith.mulf %233, %232 : vector<8x8xf32>
      %235 = vector.extract_strided_slice %169 {offsets = [13, 0], sizes = [1, 1], strides = [1, 1]} : vector<16x1xf32> to vector<1x1xf32>
      %c13_109 = arith.constant 13 : index
      %c0_110 = arith.constant 0 : index
      %c0_111 = arith.constant 0 : index
      %236 = vector.load %arg6[%c13_109, %c0_110, %c0_111] : memref<16x8x8xf32, #tpu.memory_space<vmem>>, vector<1x8x8xf32>
      %237 = vector.shape_cast %236 : vector<1x8x8xf32> to vector<8x8xf32>
      %238 = vector.broadcast %235 : vector<1x1xf32> to vector<8x8xf32>
      %239 = arith.mulf %238, %237 : vector<8x8xf32>
      %240 = vector.extract_strided_slice %169 {offsets = [14, 0], sizes = [1, 1], strides = [1, 1]} : vector<16x1xf32> to vector<1x1xf32>
      %c14_112 = arith.constant 14 : index
      %c0_113 = arith.constant 0 : index
      %c0_114 = arith.constant 0 : index
      %241 = vector.load %arg6[%c14_112, %c0_113, %c0_114] : memref<16x8x8xf32, #tpu.memory_space<vmem>>, vector<1x8x8xf32>
      %242 = vector.shape_cast %241 : vector<1x8x8xf32> to vector<8x8xf32>
      %243 = vector.broadcast %240 : vector<1x1xf32> to vector<8x8xf32>
      %244 = arith.mulf %243, %242 : vector<8x8xf32>
      %245 = vector.extract_strided_slice %169 {offsets = [15, 0], sizes = [1, 1], strides = [1, 1]} : vector<16x1xf32> to vector<1x1xf32>
      %c15_115 = arith.constant 15 : index
      %c0_116 = arith.constant 0 : index
      %c0_117 = arith.constant 0 : index
      %246 = vector.load %arg6[%c15_115, %c0_116, %c0_117] : memref<16x8x8xf32, #tpu.memory_space<vmem>>, vector<1x8x8xf32>
      %247 = vector.shape_cast %246 : vector<1x8x8xf32> to vector<8x8xf32>
      %248 = vector.broadcast %245 : vector<1x1xf32> to vector<8x8xf32>
      %249 = arith.mulf %248, %247 : vector<8x8xf32>
      %250 = arith.addf %174, %179 : vector<8x8xf32>
      %251 = arith.addf %184, %189 : vector<8x8xf32>
      %252 = arith.addf %194, %199 : vector<8x8xf32>
      %253 = arith.addf %204, %209 : vector<8x8xf32>
      %254 = arith.addf %214, %219 : vector<8x8xf32>
      %255 = arith.addf %224, %229 : vector<8x8xf32>
      %256 = arith.addf %234, %239 : vector<8x8xf32>
      %257 = arith.addf %244, %249 : vector<8x8xf32>
      %258 = arith.addf %250, %251 : vector<8x8xf32>
      %259 = arith.addf %252, %253 : vector<8x8xf32>
      %260 = arith.addf %254, %255 : vector<8x8xf32>
      %261 = arith.addf %256, %257 : vector<8x8xf32>
      %262 = arith.addf %258, %259 : vector<8x8xf32>
      %263 = arith.addf %260, %261 : vector<8x8xf32>
      %264 = arith.addf %262, %263 : vector<8x8xf32>
      %cst_118 = arith.constant dense<0.000000e+00> : vector<8x256xf32>
      %265 = tpu.matmul %264, %158, %cst_118 {dimension_numbers = #tpu.dot_dimension_numbers<[1], [0], [0], [1], [0, 0, 1, 1], [], []>} : vector<8x8xf32>, vector<8x256xf32>, vector<8x256xf32> -> vector<8x256xf32>
      %266 = arith.index_cast %149 : i32 to index
      %c0_119 = arith.constant 0 : index
      %c0_120 = arith.constant 0 : index
      %267 = vector.load %arg8[%266, %c0_119, %c0_120] : memref<4x8x256xf32, #tpu.memory_space<vmem>>, vector<1x8x256xf32>
      %268 = vector.shape_cast %267 : vector<1x8x256xf32> to vector<8x256xf32>
      %269 = vector.shape_cast %265 : vector<8x256xf32> to vector<1x8x256xf32>
      tpu.vector_store %arg8[%266, %c0_119, %c0_120], %269 {strides = array<i32>} : memref<4x8x256xf32, #tpu.memory_space<vmem>>, vector<1x8x256xf32>,
      %cst_121 = arith.constant dense<0.000000e+00> : vector<8xf32>
      %270 = vector.multi_reduction <add>, %265, %cst_121 [1] : vector<8x256xf32> to vector<8xf32>
      %271 = vector.shape_cast %270 : vector<8xf32> to vector<8x1xf32>
      %272 = arith.mulf %265, %265 : vector<8x256xf32>
      %cst_122 = arith.constant dense<0.000000e+00> : vector<8xf32>
      %273 = vector.multi_reduction <add>, %272, %cst_122 [1] : vector<8x256xf32> to vector<8xf32>
      %274 = vector.shape_cast %273 : vector<8xf32> to vector<8x1xf32>
      %275 = tpu.concatenate %271, %274 in 1 : vector<8x1xf32>, vector<8x1xf32> -> vector<8x2xf32>
      %276 = arith.addf %148, %275 : vector<8x2xf32>
      %c2_i32_123 = arith.constant 2 : i32
      %c0_124 = arith.constant 0 : index
      %c2_125 = arith.constant 2 : index
      %277 = vector.load %arg9[%c0_124, %c2_125] : memref<8x8xf32, #tpu.memory_space<vmem>>, vector<8x2xf32>
      %278 = arith.addf %277, %276 : vector<8x2xf32>
      %c0_126 = arith.constant 0 : index
      %c2_127 = arith.constant 2 : index
      %279 = vector.load %arg9[%c0_126, %c2_127] : memref<8x8xf32, #tpu.memory_space<vmem>>, vector<8x2xf32>
      tpu.vector_store %arg9[%c0_126, %c2_127], %278 {strides = array<i32>} : memref<8x8xf32, #tpu.memory_space<vmem>>, vector<8x2xf32>,
    } else {
    }
    %c2_i32_5 = arith.constant 2 : i32
    %12 = arith.cmpi eq, %arg0, %c2_i32_5 : i32
    %13 = arith.extui %12 : i1 to i32
    %c0_i32_6 = arith.constant 0 : i32
    %14 = arith.cmpi ne, %13, %c0_i32_6 : i32
    scf.if %14 {
      %c0_i32_7 = arith.constant 0 : i32
      %15 = arith.cmpi eq, %arg1, %c0_i32_7 : i32
      %16 = arith.extui %15 : i1 to i32
      %c0_i32_8 = arith.constant 0 : i32
      %17 = arith.cmpi ne, %16, %c0_i32_8 : i32
      scf.if %17 {
        %c0_26 = arith.constant 0 : index
        %c2 = arith.constant 2 : index
        %56 = vector.load %arg9[%c0_26, %c2] : memref<8x8xf32, #tpu.memory_space<vmem>>, vector<8x1xf32>
        %cst_27 = arith.constant 9.765625E-4 : f32
        %57 = vector.broadcast %cst_27 : f32 to vector<8x1xf32>
        %58 = arith.mulf %56, %57 : vector<8x1xf32>
        %c0_28 = arith.constant 0 : index
        %c3 = arith.constant 3 : index
        %59 = vector.load %arg9[%c0_28, %c3] : memref<8x8xf32, #tpu.memory_space<vmem>>, vector<8x1xf32>
        %cst_29 = arith.constant 9.765625E-4 : f32
        %60 = vector.broadcast %cst_29 : f32 to vector<8x1xf32>
        %61 = arith.mulf %59, %60 : vector<8x1xf32>
        %62 = arith.mulf %58, %58 : vector<8x1xf32>
        %63 = arith.subf %61, %62 : vector<8x1xf32>
        %cst_30 = arith.constant 9.99999974E-6 : f32
        %64 = vector.broadcast %cst_30 : f32 to vector<8x1xf32>
        %65 = arith.addf %63, %64 : vector<8x1xf32>
        %66 = math.rsqrt %65 : vector<8x1xf32>
        %c0_31 = arith.constant 0 : index
        %c2_32 = arith.constant 2 : index
        %67 = vector.load %arg7[%c0_31, %c2_32] : memref<8x4xf32, #tpu.memory_space<vmem>>, vector<8x1xf32>
        %68 = arith.mulf %66, %67 : vector<8x1xf32>
        %c0_33 = arith.constant 0 : index
        %c3_34 = arith.constant 3 : index
        %69 = vector.load %arg7[%c0_33, %c3_34] : memref<8x4xf32, #tpu.memory_space<vmem>>, vector<8x1xf32>
        %70 = arith.mulf %58, %68 : vector<8x1xf32>
        %71 = arith.subf %69, %70 : vector<8x1xf32>
        %72 = tpu.concatenate %68, %71 in 1 : vector<8x1xf32>, vector<8x1xf32> -> vector<8x2xf32>
        %c0_35 = arith.constant 0 : index
        %c6_36 = arith.constant 6 : index
        %73 = vector.load %arg9[%c0_35, %c6_36] : memref<8x8xf32, #tpu.memory_space<vmem>>, vector<8x2xf32>
        tpu.vector_store %arg9[%c0_35, %c6_36], %72 {strides = array<i32>} : memref<8x8xf32, #tpu.memory_space<vmem>>, vector<8x2xf32>,
      } else {
      }
      %c0 = arith.constant 0 : index
      %c6 = arith.constant 6 : index
      %18 = vector.load %arg9[%c0, %c6] : memref<8x8xf32, #tpu.memory_space<vmem>>, vector<8x1xf32>
      %c0_9 = arith.constant 0 : index
      %c7 = arith.constant 7 : index
      %19 = vector.load %arg9[%c0_9, %c7] : memref<8x8xf32, #tpu.memory_space<vmem>>, vector<8x1xf32>
      %c0_i32_10 = arith.constant 0 : i32
      %20 = arith.addi %0, %c0_i32_10 : i32
      %21 = arith.index_cast %20 : i32 to index
      %c0_11 = arith.constant 0 : index
      %c0_12 = arith.constant 0 : index
      %22 = vector.load %arg8[%21, %c0_11, %c0_12] : memref<4x8x256xf32, #tpu.memory_space<vmem>>, vector<1x8x256xf32>
      %23 = vector.shape_cast %22 : vector<1x8x256xf32> to vector<8x256xf32>
      %24 = vector.broadcast %18 : vector<8x1xf32> to vector<8x256xf32>
      %25 = arith.mulf %23, %24 : vector<8x256xf32>
      %26 = vector.broadcast %19 : vector<8x1xf32> to vector<8x256xf32>
      %27 = arith.addf %25, %26 : vector<8x256xf32>
      %28 = arith.index_cast %c0_i32_10 : i32 to index
      %c0_13 = arith.constant 0 : index
      %c0_14 = arith.constant 0 : index
      %29 = vector.load %arg2[%28, %c0_13, %c0_14] : memref<2x8x256xf32, #tpu.memory_space<vmem>>, vector<1x8x256xf32>
      %30 = vector.shape_cast %29 : vector<1x8x256xf32> to vector<8x256xf32>
      %31 = arith.addf %27, %30 : vector<8x256xf32>
      %cst = arith.constant 0.000000e+00 : f32
      %32 = vector.broadcast %cst : f32 to vector<8x256xf32>
      %33 = arith.maximumf %31, %32 : vector<8x256xf32>
      %34 = arith.index_cast %20 : i32 to index
      %c0_15 = arith.constant 0 : index
      %c0_16 = arith.constant 0 : index
      %35 = vector.load %arg8[%34, %c0_15, %c0_16] : memref<4x8x256xf32, #tpu.memory_space<vmem>>, vector<1x8x256xf32>
      %36 = vector.shape_cast %35 : vector<1x8x256xf32> to vector<8x256xf32>
      %37 = vector.shape_cast %33 : vector<8x256xf32> to vector<1x8x256xf32>
      tpu.vector_store %arg8[%34, %c0_15, %c0_16], %37 {strides = array<i32>} : memref<4x8x256xf32, #tpu.memory_space<vmem>>, vector<1x8x256xf32>,
      %c1_i32_17 = arith.constant 1 : i32
      %38 = arith.addi %0, %c1_i32_17 : i32
      %39 = arith.index_cast %38 : i32 to index
      %c0_18 = arith.constant 0 : index
      %c0_19 = arith.constant 0 : index
      %40 = vector.load %arg8[%39, %c0_18, %c0_19] : memref<4x8x256xf32, #tpu.memory_space<vmem>>, vector<1x8x256xf32>
      %41 = vector.shape_cast %40 : vector<1x8x256xf32> to vector<8x256xf32>
      %42 = vector.broadcast %18 : vector<8x1xf32> to vector<8x256xf32>
      %43 = arith.mulf %41, %42 : vector<8x256xf32>
      %44 = vector.broadcast %19 : vector<8x1xf32> to vector<8x256xf32>
      %45 = arith.addf %43, %44 : vector<8x256xf32>
      %46 = arith.index_cast %c1_i32_17 : i32 to index
      %c0_20 = arith.constant 0 : index
      %c0_21 = arith.constant 0 : index
      %47 = vector.load %arg2[%46, %c0_20, %c0_21] : memref<2x8x256xf32, #tpu.memory_space<vmem>>, vector<1x8x256xf32>
      %48 = vector.shape_cast %47 : vector<1x8x256xf32> to vector<8x256xf32>
      %49 = arith.addf %45, %48 : vector<8x256xf32>
      %cst_22 = arith.constant 0.000000e+00 : f32
      %50 = vector.broadcast %cst_22 : f32 to vector<8x256xf32>
      %51 = arith.maximumf %49, %50 : vector<8x256xf32>
      %52 = arith.index_cast %38 : i32 to index
      %c0_23 = arith.constant 0 : index
      %c0_24 = arith.constant 0 : index
      %53 = vector.load %arg8[%52, %c0_23, %c0_24] : memref<4x8x256xf32, #tpu.memory_space<vmem>>, vector<1x8x256xf32>
      %54 = vector.shape_cast %53 : vector<1x8x256xf32> to vector<8x256xf32>
      %55 = vector.shape_cast %51 : vector<8x256xf32> to vector<1x8x256xf32>
      tpu.vector_store %arg8[%52, %c0_23, %c0_24], %55 {strides = array<i32>} : memref<4x8x256xf32, #tpu.memory_space<vmem>>, vector<1x8x256xf32>,
      %c2_i32_25 = arith.constant 2 : i32
    } else {
    }
    return
  }
  func.func @transform_0(%arg0: i32, %arg1: i32) -> (i32, i32, i32) {
    %c1_i32 = arith.constant 1 : i32
    %0 = arith.cmpi eq, %arg0, %c1_i32 : i32
    %c0_i32 = arith.constant 0 : i32
    %1 = arith.select %0, %c0_i32, %arg1 : i32
    %c0_i32_0 = arith.constant 0 : i32
    %c0_i32_1 = arith.constant 0 : i32
    %c0_i32_2 = arith.constant 0 : i32
    return %1, %c0_i32_0, %c0_i32_1 : i32, i32, i32
  }
  func.func @transform_1(%arg0: i32, %arg1: i32) -> (i32, i32) {
    %c0_i32 = arith.constant 0 : i32
    %c0_i32_0 = arith.constant 0 : i32
    %c0_i32_1 = arith.constant 0 : i32
    return %c0_i32, %c0_i32_0 : i32, i32
  }
  func.func @transform_2(%arg0: i32, %arg1: i32) -> (i32, i32, i32) {
    %c0_i32 = arith.constant 0 : i32
    %c0_i32_0 = arith.constant 0 : i32
    %c0_i32_1 = arith.constant 0 : i32
    %c0_i32_2 = arith.constant 0 : i32
    return %c0_i32, %c0_i32_0, %c0_i32_1 : i32, i32, i32
  }
  func.func @transform_3(%arg0: i32, %arg1: i32) -> (i32, i32) {
    %c0_i32 = arith.constant 0 : i32
    %c0_i32_0 = arith.constant 0 : i32
    %c0_i32_1 = arith.constant 0 : i32
    return %c0_i32, %c0_i32_0 : i32, i32
  }
  func.func @transform_4(%arg0: i32, %arg1: i32) -> (i32, i32, i32) {
    %c0_i32 = arith.constant 0 : i32
    %c0_i32_0 = arith.constant 0 : i32
    %c0_i32_1 = arith.constant 0 : i32
    %c0_i32_2 = arith.constant 0 : i32
    return %c0_i32, %c0_i32_0, %c0_i32_1 : i32, i32, i32
  }
  func.func @transform_5(%arg0: i32, %arg1: i32) -> (i32, i32) {
    %c0_i32 = arith.constant 0 : i32
    %c0_i32_0 = arith.constant 0 : i32
    %c0_i32_1 = arith.constant 0 : i32
    return %c0_i32, %c0_i32_0 : i32, i32
  }
  func.func @transform_6(%arg0: i32, %arg1: i32) -> (i32, i32, i32) {
    %c0_i32 = arith.constant 0 : i32
    %c0_i32_0 = arith.constant 0 : i32
    %c0_i32_1 = arith.constant 0 : i32
    %c0_i32_2 = arith.constant 0 : i32
    return %c0_i32, %c0_i32_0, %c0_i32_1 : i32, i32, i32
  }
}

</mosaic_0001>

<bundles_post_ra>
// kernel: tpu_custom_call.1
= control target key start
LH: loop header
LB: loop body
LE: loop exit
PB: predicated region body
PF: predicated region fallthrough
CT: control target
= control target key end

     0   :  { %11 = vsyncpa [#allocation4], 0  ;;  %s2293_s21 = smov 0   ;;  %s2295_s22 = smov 0   ;;  %s2689_s0 = inlined_call_operand.vmem [shape: f32[4,8,256], index: 0, kind: input, shape index: {}]   ;;  %s2690_s1 = inlined_call_operand.vmem [shape: f32[16,8], index: 1, kind: input, shape index: {}]   ;;  %s2691_s2 = inlined_call_operand.vmem [shape: f32[16,8,8], index: 2, kind: input, shape index: {}]   ;;  %s2692_s3 = inlined_call_operand.vmem [shape: f32[16,8], index: 3, kind: input, shape index: {}]   ;;  %s2693_s4 = inlined_call_operand.vmem [shape: f32[16,8,8], index: 4, kind: input, shape index: {}]   ;;  %s2694_s5 = inlined_call_operand.vmem [shape: f32[8,4], index: 5, kind: input, shape index: {}]   ;;  %s2695_s6 = inlined_call_operand.hbm [shape: f32[4,8,256], index: 6, kind: output, shape index: {}]  }
   0x1   :  { %s2297_s23 = smov 0   ;;  %s2299_s24 = smov 0  }
   0x2   :  { %s2301_s25 = smov 0  }
   0x3 LB: > { %s1771_s26 = sadd.s32 4294967295, %s2237_s25   ;;  %s26_s27 = sadd.s32 1, %s2229_s23  ;;  %s2237_s25 = sphi %s2301_s25, %s17_s25   ;;  %s2233_s24 = sphi %s2299_s24, %s2700_s24   ;;  %s2229_s23 = sphi %s2297_s23, %s2699_s23   ;;  %s2225_s22 = sphi %s2295_s22, %s2698_s22   ;;  %s2221_s21 = sphi %s2293_s21, %s2697_s21  }
   0x4   : > { %p27_p0 = scmp.ge.s32.totalorder %s26_s27, 2  ;;  %s29_s28 = sadd.s32 1, %s2233_s24 }
   0x5   : > { %p1774_p1 = scmp.ge.s32.totalorder %s2237_s25, 1  ;;  %p230_p2 = scmp.lt.s32.totalorder %s2237_s25, 7 }
   0x6   : > { %s2702_s27 = smov (%p27_p0, %s26_s27), 0  ;;  %s2704_s28 = smov (!%p27_p0, %s29_s28), %s2233_s24 }
   0x7   : > { %p231_p3 = pnand %p1774_p1, %p230_p2  ;;  %p31_p4 = scmp.ge.s32.totalorder %s2704_s28, 3 }
   0x8   : > { %p258_p5 = scmp.eq.s32.totalorder (!%p231_p3), %s2225_s22, 1  ;;  %p270_p6 = scmp.eq.s32.totalorder (!%p231_p3), %s2225_s22, 0 }
   0x9   : > { %s2706_s28 = smov (%p31_p4, %s2704_s28), 0  ;;  %234 = sbr.rel (%p231_p3) target bundleno = 3260 (0xcbc), region = 44 }
   0xa   : > { %p271_p7 = scmp.eq.s32.totalorder (!%p231_p3), %s2221_s21, 0 }
   0xc   : > { %p272_p8 = pnand (!%p231_p3), %p271_p7, %p270_p6 }
  0x10   : > { %s259_s29 = scalar_select %p258_p5, 0, %s2221_s21 }
  0x11   : > { %275 = sbr.rel (%p272_p8) target bundleno = 24 (0x18), region = 48  ;;  %vm276_vm0 = vcmask (!%p272_p8), 64512   ;;  %v2239_v0 = vmov (!%p272_p8), 0.0  }
  0x12   : > { %s1775_s30 = sshll.u32 %s259_s29, 1  ;;  %277 = vst.msk [vmem:[#allocation2] sm:$0xff] (!%p272_p8), %vm276_vm0, %v2239_v0 }
  0x13   : > { %p261_p9 = scmp.lt.s32.totalorder %s1775_s30, 3 }
  0x15   : > { %s2708_s30 = smov (!%p261_p9, %s1775_s30), 3 }
  0x16   : > { %s1894_s7 = sshll.u32 %s2708_s30, 4 }
  0x17   : > { %s2335_s10 = scalar_lea.vmem %s2689_s0, %s1894_s7 }
  0x18 PF: > { %p1779_p10 = scmp.ne.s32.totalorder %s2225_s22, 0 }
  0x19   : > { %v281_v1 = vld [vmem:[%s2335_s10] sm:$0xff] (!%p1779_p10)  ;;  %v282_v2 = vld [vmem:[%s2335_s10 + $0x8] sm:$0xff] (!%p1779_p10)  ;;  %v2341_v3 = vld [vmem:[%s2335_s10 + $0x10] sm:$0xff] (!%p1779_p10)  ;;  %vm290_vm1 = vcmask (!%p1779_p10), 64512   ;;  %v2240_v13 = vmov (!%p1779_p10), 0.0   ;;  %vm597_vm2 = vcmask (!%p1779_p10), 7168  }
  0x1a   : > { %280 = sbr.rel (%p1779_p10) target bundleno = 871 (0x367), region = 52  ;;  %v283_v4 = vadd.f32 (!%p1779_p10), %v282_v2, %v281_v1  ;;  %v1803_v5 = vld [vmem:[%s2335_s10 + $0x18] sm:$0xff] (!%p1779_p10)  ;;  %513 = vmatprep.subr.mxu1 (!%p1779_p10), %v282_v2  ;;  %v288_v7 = vld [vmem:[%s2690_s1] sm:$0xff] (!%p1779_p10)  ;;  %v289_v10 = vld [vmem:[%s2690_s1 + $0x8] sm:$0xff] (!%p1779_p10)  ;;  %577 = vmatprep.mubr.f32.mxu1 (!%p1779_p10), %v2240_v13  ;;  %vm905_vm3 = vcmask (!%p1779_p10), 15360  }
  0x1b   : > { %514 = vmatpush1.msra.mxu1 (!%p1779_p10), %v281_v1  ;;  %v603_v6 = vadd.f32 (!%p1779_p10), %v1803_v5, %v2341_v3  ;;  %1918 = vmatprep.mubr.msk.f32.mxu0 (!%p1779_p10), %vm290_vm1, %v288_v7  ;;  %v2361_v62 = vld [vmem:[%s2691_s2 + $0x8] sm:$0xff] (!%p1779_p10)  ;;  %v2366_v0 = vld [vmem:[%s2691_s2 + $0x10] sm:$0xff] (!%p1779_p10)  ;;  %v2371_v1 = vld [vmem:[%s2691_s2 + $0x18] sm:$0xff] (!%p1779_p10) }
  0x1c   : > { %284 = vadd.xlane.f32.xlu0 (!%p1779_p10), %v283_v4  ;;  %816 = vmatprep.subr.mxu1 (!%p1779_p10), %v1803_v5  ;;  %v2376_v2 = vld [vmem:[%s2691_s2 + $0x20] sm:$0xff] (!%p1779_p10) }
  0x1d   : > { %v2381_v4 = vld [vmem:[%s2691_s2] sm:$0xff] (!%p1779_p10) }
  0x20   : > { %604 = vadd.xlane.f32.xlu0 (!%p1779_p10), %v603_v6 }
  0xa9   : > { %v285_v8 = vpop.xlane.xlu0 %284 }
  0xaa   : > { %v287_v9 = vmul.f32 0.00390625, %v285_v8  ;;  %v2386_v8 = vld [vmem:[%s2691_s2 + $0x28] sm:$0xff] }
  0xac   : > { %1916 = vmatprep.subr.mxu0 %v287_v9 }
  0xad   : > { %1917 = vmatpush3.msra.mxu0 %v287_v9  ;;  %v605_v11 = vpop.xlane.xlu0 %604 }
  0xae   : > { %v606_v12 = vmul.f32 0.00390625, %v605_v11  ;;  %1919 = vmatmul.mubr.msk.f32.vlgmr.msra.gmra.mrb[0].mxu0 %vm290_vm1, %v289_v10 }
  0xaf   : > { %1923 = vmatprep.mubr.msk.f32.mxu0 %vm290_vm1, %v288_v7 }
  0xb0   : > { %1921 = vmatprep.subr.mxu0 %v606_v12 }
  0xb1   : > { %1922 = vmatpush3.msra.mxu0 %v606_v12  ;;  %v2396_v12 = vld [vmem:[%s2691_s2 + $0x38] sm:$0xff] }
  0xb2   : > { %1924 = vmatmul.mubr.msk.f32.vlgmr.msra.gmra.mrb[2].mxu0 %vm290_vm1, %v289_v10  ;;  %v2391_v10 = vld [vmem:[%s2691_s2 + $0x30] sm:$0xff] }
 0x181   : > { %v1920_v14 = vpop.f32.mrb[0].mxu0 }
 0x182   : > { %v1783_v15 = vmul.f32 -1.442695, %v1920_v14  ;;  %v363_v16 = vpop.f32.mrb[1].mxu0 }
 0x183   : > { %v1782_v17 = vmul.f32 -1.442695, %v363_v16 }
 0x184   : > { %2129 = vpow2.f32 %v1783_v15 }
 0x185   : > { %2131 = vpow2.f32 %v1782_v17  ;;  %v1925_v18 = vpop.f32.mrb[2].mxu0  ;;  %v2403_v17 = vld [vmem:[%s2691_s2 + $0x40] sm:$0xff] }
 0x186   : > { %v681_v19 = vpop.f32.mrb[3].mxu0  ;;  %v1807_v24 = vmul.f32 -1.442695, %v1925_v18  ;;  %v2408_v18 = vld [vmem:[%s2691_s2 + $0x48] sm:$0xff] }
 0x187   : > { %v1806_v20 = vmul.f32 -1.442695, %v681_v19 }
 0x189   : > { %2133 = vpow2.f32 %v1806_v20 }
 0x18e   : > { %v2130_v21 = vpop.eup %2129 }
 0x18f   : > { %v2132_v22 = vpop.eup %2131  ;;  %v379_v25 = vadd.f32 1.0, %v2130_v21 }
 0x190   : > { %v378_v23 = vadd.f32 1.0, %v2132_v22 }
 0x192   : > { %2135 = vrcp.f32 %v378_v23  ;;  %v2416_v23 = vld [vmem:[%s2691_s2 + $0x50] sm:$0xff] }
 0x193   : > { %2137 = vpow2.f32 %v1807_v24  ;;  %v2134_v26 = vpop.eup %2133 }
 0x194   : > { %2139 = vrcp.f32 %v379_v25  ;;  %v696_v27 = vadd.f32 1.0, %v2134_v26 }
 0x196   : > { %2141 = vrcp.f32 %v696_v27 }
 0x19c   : > { %v2136_v28 = vpop.eup %2135 }
 0x19d   : > { %1936 = vpush %v2136_v28  ;;  %v392_v29 = vrot.slane %v2136_v28, 1  ;;  %v399_v30 = vrot.slane %v2136_v28, 2  ;;  %v406_v31 = vrot.slane %v2136_v28, 3  ;;  %v413_v32 = vrot.slane %v2136_v28, 4  ;;  %v2138_v33 = vpop.eup %2137 }
 0x19e   : > { %v420_v34 = vrot.slane %v2136_v28, 5  ;;  %v2140_v35 = vpop.eup %2139  ;;  %v427_v36 = vrot.slane %v2136_v28, 6  ;;  %v434_v37 = vrot.slane %v2136_v28, 7  ;;  %v697_v38 = vadd.f32 1.0, %v2138_v33  ;;  %v2424_v28 = vld [vmem:[%s2691_s2 + $0x58] sm:$0xff]  ;;  %v2432_v33 = vld [vmem:[%s2691_s2 + $0x60] sm:$0xff] }
 0x19f   : > { %1938 = vpush %v392_v29  ;;  %v448_v39 = vrot.slane %v2140_v35, 1  ;;  %v455_v40 = vrot.slane %v2140_v35, 2  ;;  %v462_v41 = vrot.slane %v2140_v35, 3  ;;  %v469_v42 = vrot.slane %v2140_v35, 4 }
 0x1a0   : > { %1940 = vpush %v399_v30  ;;  %2143 = vrcp.f32 %v697_v38  ;;  %v476_v43 = vrot.slane %v2140_v35, 5  ;;  %v2142_v44 = vpop.eup %2141  ;;  %v483_v45 = vrot.slane %v2140_v35, 6  ;;  %v490_v46 = vrot.slane %v2140_v35, 7 }
 0x1a1   : > { %1942 = vpush %v406_v31  ;;  %v709_v47 = vrot.slane %v2142_v44, 1  ;;  %v715_v48 = vrot.slane %v2142_v44, 2  ;;  %v721_v49 = vrot.slane %v2142_v44, 3  ;;  %v727_v50 = vrot.slane %v2142_v44, 4 }
 0x1a2   : > { %1944 = vpush %v413_v32  ;;  %v733_v51 = vrot.slane %v2142_v44, 5  ;;  %v739_v53 = vrot.slane %v2142_v44, 6  ;;  %v745_v54 = vrot.slane %v2142_v44, 7 }
 0x1a3   : > { %1946 = vpush %v420_v34 }
 0x1a4   : > { %1948 = vpush %v427_v36  ;;  %v2438_v36 = vld [vmem:[%s2691_s2 + $0x68] sm:$0xff] }
 0x1a5   : > { %1950 = vpush %v434_v37 }
 0x1a6   : > { %1952 = vpush %v2140_v35 }
 0x1a7   : > { %1954 = vpush %v448_v39 }
 0x1a8   : > { %1956 = vpush %v455_v40 }
 0x1a9   : > { %1958 = vpush %v462_v41  ;;  %v2444_v41 = vld [vmem:[%s2691_s2 + $0x70] sm:$0xff] }
 0x1aa   : > { %1960 = vpush %v469_v42  ;;  %v2144_v52 = vpop.eup %2143 }
 0x1ab   : > { %1962 = vpush %v476_v43  ;;  %v757_v55 = vrot.slane %v2144_v52, 1  ;;  %v763_v56 = vrot.slane %v2144_v52, 2  ;;  %v769_v57 = vrot.slane %v2144_v52, 3  ;;  %v775_v58 = vrot.slane %v2144_v52, 4 }
 0x1ac   : > { %1964 = vpush %v483_v45  ;;  %v781_v59 = vrot.slane %v2144_v52, 5  ;;  %v787_v60 = vrot.slane %v2144_v52, 6  ;;  %v793_v61 = vrot.slane %v2144_v52, 7 }
 0x1ad   : > { %1966 = vpush %v490_v46  ;;  %v2450_v46 = vld [vmem:[%s2691_s2 + $0x78] sm:$0xff] }
 0x1ae   : > { %1968 = vpush %v2142_v44 }
 0x1af   : > { %1970 = vpush %v709_v47 }
 0x1b0   : > { %1972 = vpush %v715_v48 }
 0x1b1   : > { %1974 = vpush %v721_v49 }
 0x1b2   : > { %1976 = vpush %v727_v50 }
 0x1b3   : > { %1978 = vpush %v733_v51 }
 0x1b4   : > { %1980 = vpush %v739_v53 }
 0x1b5   : > { %1982 = vpush %v745_v54 }
 0x1b6   : > { %1984 = vpush %v2144_v52 }
 0x1b7   : > { %1986 = vpush %v757_v55 }
 0x1b8   : > { %1988 = vpush %v763_v56 }
 0x1b9   : > { %1990 = vpush %v769_v57 }
 0x1ba   : > { %1992 = vpush %v775_v58 }
 0x1bb   : > { %1994 = vpush %v781_v59 }
 0x1bc   : > { %1996 = vpush %v787_v60 }
 0x1bd   : > { %1998 = vpush %v793_v61 }
 0x1ce   : > { %s2356_s15 = spop %1936 }
 0x1cf   : > { %v387_v14 = vstv %s2356_s15 }
 0x1d0   : > { %s1939_s16 = spop %1938  ;;  %v389_v29 = vmul.f32 %v387_v14, %v2381_v4 }
 0x1d1   : > { %s1941_s17 = spop %1940  ;;  %v394_v63 = vstv %s1939_s16 }
 0x1d2   : > { %s1943_s18 = spop %1942  ;;  %v401_v5 = vstv %s1941_s17  ;;  %v396_v15 = vmul.f32 %v2361_v62, %v394_v63 }
 0x1d3   : > { %s1945_s29 = spop %1944  ;;  %v408_v6 = vstv %s1943_s18  ;;  %v403_v19 = vmul.f32 %v2366_v0, %v401_v5 }
 0x1d4   : > { %s1947_s13 = spop %1946  ;;  %v415_v7 = vstv %s1945_s29  ;;  %v410_v20 = vmul.f32 %v2371_v1, %v408_v6  ;;  %v495_v37 = vadd.f32 %v396_v15, %v389_v29 }
 0x1d5   : > { %s1949_s30 = spop %1948  ;;  %v422_v9 = vstv %s1947_s13  ;;  %v417_v21 = vmul.f32 %v2376_v2, %v415_v7 }
 0x1d6   : > { %v429_v11 = vstv %s1949_s30  ;;  %s1951_s17 = spop %1950  ;;  %v424_v24 = vmul.f32 %v2386_v8, %v422_v9  ;;  %v496_v38 = vadd.f32 %v410_v20, %v403_v19 }
 0x1d7   : > { %v436_v16 = vstv %s1951_s17  ;;  %s1953_s12 = spop %1952  ;;  %v431_v25 = vmul.f32 %v2391_v10, %v429_v11 }
 0x1d8   : > { %v443_v22 = vstv %s1953_s12  ;;  %s1955_s15 = spop %1954  ;;  %v438_v26 = vmul.f32 %v2396_v12, %v436_v16  ;;  %v497_v42 = vadd.f32 %v424_v24, %v417_v21  ;;  %v503_v55 = vadd.f32 %v496_v38, %v495_v37 }
 0x1d9   : > { %v450_v27 = vstv %s1955_s15  ;;  %s1957_s20 = spop %1956  ;;  %v445_v30 = vmul.f32 %v2403_v17, %v443_v22 }
 0x1da   : > { %v452_v31 = vmul.f32 %v2408_v18, %v450_v27  ;;  %v457_v32 = vstv %s1957_s20  ;;  %s1959_s8 = spop %1958  ;;  %v498_v43 = vadd.f32 %v438_v26, %v431_v25 }
 0x1db   : > { %v459_v34 = vmul.f32 %v2416_v23, %v457_v32  ;;  %v464_v35 = vstv %s1959_s8  ;;  %s1961_s17 = spop %1960 }
 0x1dc   : > { %v466_v39 = vmul.f32 %v2424_v28, %v464_v35  ;;  %v471_v40 = vstv %s1961_s17  ;;  %s1963_s12 = spop %1962  ;;  %v499_v47 = vadd.f32 %v452_v31, %v445_v30  ;;  %v504_v56 = vadd.f32 %v498_v43, %v497_v42 }
 0x1dd   : > { %v473_v44 = vmul.f32 %v2432_v33, %v471_v40  ;;  %v478_v45 = vstv %s1963_s12  ;;  %s1965_s15 = spop %1964 }
 0x1de   : > { %v500_v48 = vadd.f32 %v466_v39, %v459_v34  ;;  %v480_v49 = vmul.f32 %v2438_v36, %v478_v45  ;;  %v485_v50 = vstv %s1965_s15  ;;  %s1967_s20 = spop %1966  ;;  %v507_v7 = vadd.f32 %v504_v56, %v503_v55 }
 0x1df   : > { %v487_v51 = vmul.f32 %v2444_v41, %v485_v50  ;;  %v492_v52 = vstv %s1967_s20  ;;  %s1969_s30 = spop %1968 }
 0x1e0   : > { %v501_v53 = vadd.f32 %v480_v49, %v473_v44  ;;  %v494_v54 = vmul.f32 %v2450_v46, %v492_v52  ;;  %s1971_s7 = spop %1970  ;;  %v505_v57 = vadd.f32 %v500_v48, %v499_v47  ;;  %v705_v59 = vstv %s1969_s30 }
 0x1e1   : > { %s1973_s8 = spop %1972  ;;  %v711_v60 = vstv %s1971_s7  ;;  %v707_v14 = vmul.f32 %v705_v59, %v2381_v4  ;;  %s1896_s7 = sshll.u32 %s2221_s21, 5 }
 0x1e2   : > { %v502_v58 = vadd.f32 %v494_v54, %v487_v51  ;;  %s1975_s9 = spop %1974  ;;  %v717_v63 = vstv %s1973_s8  ;;  %v713_v15 = vmul.f32 %v2361_v62, %v711_v60  ;;  %s586_s8 = scalar_lea.vmem [#allocation3], %s1896_s7 }
 0x1e3   : > { %s1977_s11 = spop %1976  ;;  %v723_v5 = vstv %s1975_s9  ;;  %v719_v19 = vmul.f32 %v2366_v0, %v717_v63 }
 0x1e4   : > { %v506_v61 = vadd.f32 %v502_v58, %v501_v53  ;;  %v729_v6 = vstv %s1977_s11  ;;  %s1979_s17 = spop %1978  ;;  %v725_v20 = vmul.f32 %v2371_v1, %v723_v5  ;;  %v903_v5 = vld [vmem:[#allocation2] sm:$0xff] }
 0x1e5   : > { %v735_v9 = vstv %s1979_s17  ;;  %s1981_s18 = spop %1980  ;;  %v731_v21 = vmul.f32 %v2376_v2, %v729_v6  ;;  %v798_v2 = vadd.f32 %v713_v15, %v707_v14 }
 0x1e6   : > { %v508_v11 = vadd.f32 %v506_v61, %v505_v57  ;;  %v741_v16 = vstv %s1981_s18  ;;  %s1983_s29 = spop %1982  ;;  %v737_v24 = vmul.f32 %v2386_v8, %v735_v9  ;;  %v799_v30 = vadd.f32 %v725_v20, %v719_v19 }
 0x1e7   : > { %v747_v22 = vstv %s1983_s29  ;;  %s1985_s12 = spop %1984  ;;  %v743_v25 = vmul.f32 %v2391_v10, %v741_v16 }
 0x1e8   : > { %v749_v26 = vmul.f32 %v2396_v12, %v747_v22  ;;  %v753_v27 = vstv %s1985_s12  ;;  %s1987_s13 = spop %1986  ;;  %v509_v62 = vadd.f32 %v508_v11, %v507_v7  ;;  %v800_v10 = vadd.f32 %v737_v24, %v731_v21 }
 0x1e9   : > { %v759_v4 = vstv %s1987_s13  ;;  %s1989_s14 = spop %1988  ;;  %v755_v29 = vmul.f32 %v2403_v17, %v753_v27  ;;  %v806_v40 = vadd.f32 %v799_v30, %v798_v2 }
 0x1ea   : > { %v761_v0 = vmul.f32 %v2408_v18, %v759_v4  ;;  %v765_v1 = vstv %s1989_s14  ;;  %s1991_s15 = spop %1990  ;;  %1799 = vmatmul.mubr.msk.f32.vlgmr.msra.gmra.mrb[0].mxu1 %vm290_vm1, %v509_v62  ;;  %v801_v12 = vadd.f32 %v749_v26, %v743_v25 }
 0x1eb   : > { %v767_v31 = vmul.f32 %v2416_v23, %v765_v1  ;;  %v771_v8 = vstv %s1991_s15  ;;  %s1993_s19 = spop %1992  ;;  %817 = vmatpush1.msra.mxu1 %v2341_v3  ;;  %880 = vmatprep.mubr.f32.mxu1 %v2240_v13 }
 0x1ec   : > { %v773_v32 = vmul.f32 %v2424_v28, %v771_v8  ;;  %v777_v34 = vstv %s1993_s19  ;;  %s1995_s16 = spop %1994  ;;  %v802_v35 = vadd.f32 %v761_v0, %v755_v29  ;;  %v807_v42 = vadd.f32 %v801_v12, %v800_v10 }
 0x1ed   : > { %v779_v17 = vmul.f32 %v2432_v33, %v777_v34  ;;  %v783_v18 = vstv %s1995_s16  ;;  %s1997_s20 = spop %1996 }
 0x1ee   : > { %v803_v23 = vadd.f32 %v773_v32, %v767_v31  ;;  %v785_v37 = vmul.f32 %v2438_v36, %v783_v18  ;;  %v789_v38 = vstv %s1997_s20  ;;  %s1999_s30 = spop %1998  ;;  %v810_v33 = vadd.f32 %v807_v42, %v806_v40 }
 0x1ef   : > { %v791_v39 = vmul.f32 %v2444_v41, %v789_v38  ;;  %v795_v28 = vstv %s1999_s30 }
 0x1f0   : > { %v804_v43 = vadd.f32 %v785_v37, %v779_v17  ;;  %v797_v3 = vmul.f32 %v2450_v46, %v795_v28  ;;  %v808_v13 = vadd.f32 %v803_v23, %v802_v35 }
 0x1f2   : > { %v805_v44 = vadd.f32 %v797_v3, %v791_v39 }
 0x1f4   : > { %v809_v45 = vadd.f32 %v805_v44, %v804_v43 }
 0x1f6   : > { %v811_v47 = vadd.f32 %v809_v45, %v808_v13 }
 0x1f8   : > { %v812_v48 = vadd.f32 %v811_v47, %v810_v33 }
 0x1fa   : > { %1823 = vmatmul.mubr.msk.f32.vlgmr.msra.gmra.mrb[2].mxu1 %vm290_vm1, %v812_v48 }
 0x2bd   : > { %v579_v36 = vpop.f32.mrb[0].mxu1 }
 0x2be   : > { %587 = vst [vmem:[%s586_s8] sm:$0xff] %v579_v36  ;;  %v581_v49 = vpop.f32.mrb[1].mxu1  ;;  %v592_v41 = vmul.f32 %v579_v36, %v579_v36 }
 0x2bf   : > { %588 = vst [vmem:[%s586_s8 + $0x8] sm:$0xff] %v581_v49  ;;  %v589_v50 = vadd.f32 %v581_v49, %v579_v36  ;;  %v593_v51 = vmul.f32 %v581_v49, %v581_v49 }
 0x2c1   : > { %590 = vadd.xlane.f32.xlu1 %v589_v50  ;;  %v594_v52 = vadd.f32 %v593_v51, %v592_v41 }
 0x2c5   : > { %595 = vadd.xlane.f32.xlu1 %v594_v52 }
 0x2cd   : > { %v882_v46 = vpop.f32.mrb[2].mxu1 }
 0x2ce   : > { %1826 = vst [vmem:[%s586_s8 + $0x10] sm:$0xff] %v882_v46  ;;  %v884_v53 = vpop.f32.mrb[3].mxu1  ;;  %v896_v54 = vmul.f32 %v882_v46, %v882_v46 }
 0x2cf   : > { %1827 = vst [vmem:[%s586_s8 + $0x18] sm:$0xff] %v884_v53  ;;  %v897_v55 = vmul.f32 %v884_v53, %v884_v53  ;;  %v893_v56 = vadd.f32 %v884_v53, %v882_v46 }
 0x2d1   : > { %894 = vadd.xlane.f32.xlu0 %v893_v56  ;;  %v898_v57 = vadd.f32 %v897_v55, %v896_v54 }
 0x2d3   : > { %899 = vadd.xlane.f32.xlu1 %v898_v57 }
 0x34e   : > { %v591_v58 = vpop.xlane.xlu1 %590 }
 0x352   : > { %v596_v59 = vpop.xlane.xlu1 %595 }
 0x353   : > { %v598_v63 = vsel %vm597_vm2, %v591_v58, %v596_v59 }
 0x35e   : > { %v895_v60 = vpop.xlane.xlu0 %894 }
 0x360   : > { %v900_v61 = vpop.xlane.xlu1 %899 }
 0x361   : > { %v901_v6 = vsel %vm597_vm2, %v895_v60, %v900_v61 }
 0x362   : > { %v902_v7 = vadd.f32 %v901_v6, %v598_v63 }
 0x364   : > { %v904_v9 = vadd.f32 %v903_v5, %v902_v7 }
 0x366   : > { %906 = vst.msk [vmem:[#allocation2] sm:$0xff] %vm905_vm3, %v904_v9 }
 0x367 PF: > { %p1828_p11 = scmp.ne.s32.totalorder %s2225_s22, 1 }
 0x368   : > { %p1829_p12 = scmp.ne.s32.totalorder (!%p1828_p11), %s2221_s21, 0 }
 0x369   : > { %910 = sbr.rel (%p1828_p11) target bundleno = 2474 (0x9aa), region = 56 }
 0x370   : > { %913 = sbr.rel (%p1829_p12) target bundleno = 1368 (0x558), region = 60  ;;  %v914_v11 = vld [vmem:[#allocation2] sm:$0xff] (!%p1829_p12)  ;;  %s2241_s9 = smov (!%p1829_p12), 1   ;;  %vm940_vm4 = vcmask (!%p1829_p12), 7168   ;;  %vm946_vm5 = vcmask (!%p1829_p12), 48160  }
 0x371   : > { %v915_v14 = vmul.f32 (!%p1829_p12), 0.0009765625, %v914_v11  ;;  %v924_v16 = vld [vmem:[%s2694_s5] sm:$0xff] (!%p1829_p12)  ;;  %s2242_s18 = smov (!%p1829_p12), 127   ;;  %s2243_s29 = smov (!%p1829_p12), 4  }
 0x373   : > { %v916_v15 = vmul.f32 (!%p1829_p12), %v915_v14, %v915_v14 }
 0x375   : > { %918 = vrot.lane.b32.xlu0 (!%p1829_p12), %v916_v15, %s2241_s9 }
 0x379   : > { %926 = vrot.lane.b32.xlu0 %v924_v16, %s2241_s9 }
 0x3e7   : > { %v919_v19 = vpop.permute.xlu0 %918 }
 0x3e8   : > { %v921_v20 = vsub.f32 %v915_v14, %v919_v19 }
 0x3ea   : > { %v922_v21 = vadd.f32 1e-05, %v921_v20 }
 0x3eb   : > { %v927_v22 = vpop.permute.xlu0 %926 }
 0x3ec   : > { %2145 = vrsqrt.f32 %v922_v21 }
 0x3f6   : > { %v2146_v24 = vpop.eup %2145 }
 0x3f7   : > { %v929_v25 = vmul.f32 %v2146_v24, %v927_v22 }
 0x3f9   : > { %931 = vrot.lane.b32.xlu1 %v929_v25, %s2242_s18 }
 0x46b   : > { %v932_v26 = vpop.permute.xlu1 %931 }
 0x46c   : > { %v934_v27 = vmul.f32 %v932_v26, %v915_v14 }
 0x46e   : > { %936 = vrot.lane.b32.xlu1 %v934_v27, %s2241_s9 }
 0x4e0   : > { %v937_v4 = vpop.permute.xlu1 %936 }
 0x4e1   : > { %v939_v62 = vsub.f32 %v924_v16, %v937_v4 }
 0x4e3   : > { %v941_v29 = vsel %vm940_vm4, %v932_v26, %v939_v62 }
 0x4e4   : > { %943 = vrot.lane.b32.xlu0 %v941_v29, %s2243_s29 }
 0x556   : > { %v944_v0 = vpop.permute.xlu0 %943 }
 0x557   : > { %947 = vst.msk [vmem:[#allocation2] sm:$0xff] %vm946_vm5, %v944_v0 }
 0x558 PF: > { %v2244_v2 = vmov 4   ;;  %v2245_v30 = vmov 5   ;;  %s1899_s12 = sshll.u32 %s2221_s21, 5  ;;  %v974_v33 = vld [vmem:[%s2692_s3] sm:$0xff]  ;;  %vm976_vm6 = vcmask 64512   ;;  %v975_v48 = vld [vmem:[%s2692_s3 + $0x8] sm:$0xff] }
 0x559   : > { %2147 = vset.pattern.permute.xlu0 %v2244_v2  ;;  %s2486_s13 = scalar_lea.vmem [#allocation3], %s1899_s12  ;;  %1928 = vmatprep.mubr.msk.f32.mxu0 %vm976_vm6, %v974_v33  ;;  %v2246_v41 = vmov 0.0   ;;  %vm1280_vm7 = vcmask 7168   ;;  %vm1597_vm8 = vcmask 31760  }
 0x55a   : > { %v1854_v31 = vld [vmem:[%s2486_s13 + $0x10] sm:$0xff]  ;;  %v1855_v10 = vld [vmem:[%s2486_s13 + $0x18] sm:$0xff]  ;;  %v953_v12 = vld [vmem:[%s2486_s13 + $0x8] sm:$0xff]  ;;  %1263 = vmatprep.mubr.f32.mxu1 %v2246_v41 }
 0x55b   : > { %v952_v32 = vld [vmem:[%s2486_s13] sm:$0xff] }
 0x55e   : > { %v2481_v1 = vld [vmem:[#allocation2] sm:$0xff] }
 0x55f   : > { %956 = vperm.xlu0 %2147, %v2481_v1  }
 0x563   : > { %2148 = vset.pattern.permute.xlu0 %v2245_v30 }
 0x564   : > { %962 = vperm.xlu0 %2148, %v2481_v1  }
 0x5de   : > { %v957_v8 = vpop.permute.xlu0 %956 }
 0x5df   : > { %v1289_v34 = vmul.f32 %v1854_v31, %v957_v8  ;;  %v1290_v17 = vmul.f32 %v1855_v10, %v957_v8  ;;  %v960_v18 = vmul.f32 %v957_v8, %v953_v12  ;;  %v959_v35 = vmul.f32 %v957_v8, %v952_v32 }
 0x5e3   : > { %v963_v23 = vpop.permute.xlu0 %962 }
 0x5e4   : > { %v966_v37 = vadd.f32 %v963_v23, %v960_v18  ;;  %v965_v38 = vadd.f32 %v963_v23, %v959_v35  ;;  %v1292_v39 = vadd.f32 %v1290_v17, %v963_v23  ;;  %v2492_v28 = vadd.f32 %v1289_v34, %v963_v23 }
 0x5e6   : > { %v968_v40 = vmax.f32 %v966_v37, 0.0  ;;  %v967_v42 = vmax.f32 %v965_v38, 0.0  ;;  %v1294_v3 = vmax.f32 %v1292_v39, 0.0  ;;  %v1293_v13 = vmax.f32 %v2492_v28, 0.0  ;;  %v2513_v39 = vld [vmem:[%s2693_s4 + $0x8] sm:$0xff] }
 0x5e8   : > { %1199 = vmatprep.subr.mxu1 %v968_v40  ;;  %v969_v43 = vadd.f32 %v968_v40, %v967_v42  ;;  %v1295_v44 = vadd.f32 %v1294_v3, %v1293_v13 }
 0x5e9   : > { %1200 = vmatpush1.msra.mxu1 %v967_v42  ;;  %v2518_v42 = vld [vmem:[%s2693_s4 + $0x10] sm:$0xff] }
 0x5ea   : > { %970 = vadd.xlane.f32.xlu1 %v969_v43  ;;  %1508 = vmatprep.subr.mxu1 %v1294_v3  ;;  %v2523_v43 = vld [vmem:[%s2693_s4 + $0x18] sm:$0xff]  ;;  %v2528_v3 = vld [vmem:[%s2693_s4 + $0x20] sm:$0xff] }
 0x5ee   : > { %1296 = vadd.xlane.f32.xlu1 %v1295_v44  ;;  %v2533_v44 = vld [vmem:[%s2693_s4] sm:$0xff] }
 0x677   : > { %v971_v45 = vpop.xlane.xlu1 %970 }
 0x678   : > { %v973_v47 = vmul.f32 0.00390625, %v971_v45 }
 0x67a   : > { %1926 = vmatprep.subr.mxu0 %v973_v47 }
 0x67b   : > { %1927 = vmatpush3.msra.mxu0 %v973_v47  ;;  %v1297_v36 = vpop.xlane.xlu1 %1296 }
 0x67c   : > { %v1298_v49 = vmul.f32 0.00390625, %v1297_v36  ;;  %1929 = vmatmul.mubr.msk.f32.vlgmr.msra.gmra.mrb[0].mxu0 %vm976_vm6, %v975_v48 }
 0x67d   : > { %1933 = vmatprep.mubr.msk.f32.mxu0 %vm976_vm6, %v974_v33 }
 0x67e   : > { %1931 = vmatprep.subr.mxu0 %v1298_v49 }
 0x67f   : > { %1932 = vmatpush3.msra.mxu0 %v1298_v49  ;;  %v2543_v49 = vld [vmem:[%s2693_s4 + $0x30] sm:$0xff] }
 0x680   : > { %1934 = vmatmul.mubr.msk.f32.vlgmr.msra.gmra.mrb[2].mxu0 %vm976_vm6, %v975_v48  ;;  %v2538_v48 = vld [vmem:[%s2693_s4 + $0x28] sm:$0xff] }
 0x74f   : > { %v1930_v50 = vpop.f32.mrb[0].mxu0 }
 0x750   : > { %v1835_v51 = vmul.f32 -1.442695, %v1930_v50  ;;  %v1049_v52 = vpop.f32.mrb[1].mxu0 }
 0x751   : > { %v1834_v46 = vmul.f32 -1.442695, %v1049_v52 }
 0x752   : > { %2149 = vpow2.f32 %v1835_v51  ;;  %v2548_v51 = vld [vmem:[%s2693_s4 + $0x38] sm:$0xff] }
 0x753   : > { %2151 = vpow2.f32 %v1834_v46  ;;  %v1935_v53 = vpop.f32.mrb[2].mxu0 }
 0x754   : > { %v1373_v54 = vpop.f32.mrb[3].mxu0  ;;  %v1859_v59 = vmul.f32 -1.442695, %v1935_v53 }
 0x755   : > { %v1858_v55 = vmul.f32 -1.442695, %v1373_v54  ;;  %v2555_v54 = vld [vmem:[%s2693_s4 + $0x40] sm:$0xff] }
 0x757   : > { %2153 = vpow2.f32 %v1858_v55  ;;  %v2560_v55 = vld [vmem:[%s2693_s4 + $0x48] sm:$0xff] }
 0x75c   : > { %v2150_v56 = vpop.eup %2149 }
 0x75d   : > { %v2152_v57 = vpop.eup %2151  ;;  %v1065_v60 = vadd.f32 1.0, %v2150_v56 }
 0x75e   : > { %v1064_v58 = vadd.f32 1.0, %v2152_v57 }
 0x760   : > { %2155 = vrcp.f32 %v1064_v58 }
 0x761   : > { %2157 = vpow2.f32 %v1859_v59  ;;  %v2154_v61 = vpop.eup %2153 }
 0x762   : > { %2159 = vrcp.f32 %v1065_v60  ;;  %v1388_v63 = vadd.f32 1.0, %v2154_v61  ;;  %v2568_v60 = vld [vmem:[%s2693_s4 + $0x50] sm:$0xff] }
 0x764   : > { %2161 = vrcp.f32 %v1388_v63 }
 0x76a   : > { %v2156_v5 = vpop.eup %2155 }
 0x76b   : > { %2000 = vpush %v2156_v5  ;;  %v1078_v6 = vrot.slane %v2156_v5, 1  ;;  %v1085_v7 = vrot.slane %v2156_v5, 2  ;;  %v1092_v9 = vrot.slane %v2156_v5, 3  ;;  %v1099_v11 = vrot.slane %v2156_v5, 4  ;;  %v2158_v14 = vpop.eup %2157 }
 0x76c   : > { %v1106_v15 = vrot.slane %v2156_v5, 5  ;;  %v2160_v16 = vpop.eup %2159  ;;  %v1113_v19 = vrot.slane %v2156_v5, 6  ;;  %v1120_v20 = vrot.slane %v2156_v5, 7  ;;  %v1389_v21 = vadd.f32 1.0, %v2158_v14 }
 0x76d   : > { %2002 = vpush %v1078_v6  ;;  %v1134_v22 = vrot.slane %v2160_v16, 1  ;;  %v1141_v24 = vrot.slane %v2160_v16, 2  ;;  %v1148_v25 = vrot.slane %v2160_v16, 3  ;;  %v1155_v26 = vrot.slane %v2160_v16, 4 }
 0x76e   : > { %2004 = vpush %v1085_v7  ;;  %2163 = vrcp.f32 %v1389_v21  ;;  %v1162_v27 = vrot.slane %v2160_v16, 5  ;;  %v2162_v4 = vpop.eup %2161  ;;  %v1169_v62 = vrot.slane %v2160_v16, 6  ;;  %v1176_v29 = vrot.slane %v2160_v16, 7  ;;  %v2576_v7 = vld [vmem:[%s2693_s4 + $0x58] sm:$0xff]  ;;  %v2590_v21 = vld [vmem:[%s2693_s4 + $0x68] sm:$0xff] }
 0x76f   : > { %2006 = vpush %v1092_v9  ;;  %v1401_v0 = vrot.slane %v2162_v4, 1  ;;  %v1407_v2 = vrot.slane %v2162_v4, 2  ;;  %v1413_v30 = vrot.slane %v2162_v4, 3  ;;  %v1419_v31 = vrot.slane %v2162_v4, 4 }
 0x770   : > { %2008 = vpush %v1099_v11  ;;  %v1425_v8 = vrot.slane %v2162_v4, 5  ;;  %v1431_v12 = vrot.slane %v2162_v4, 6  ;;  %v1437_v32 = vrot.slane %v2162_v4, 7 }
 0x771   : > { %2010 = vpush %v1106_v15 }
 0x772   : > { %2012 = vpush %v1113_v19 }
 0x773   : > { %2014 = vpush %v1120_v20 }
 0x774   : > { %2016 = vpush %v2160_v16  ;;  %v2584_v16 = vld [vmem:[%s2693_s4 + $0x60] sm:$0xff] }
 0x775   : > { %2018 = vpush %v1134_v22 }
 0x776   : > { %2020 = vpush %v1141_v24 }
 0x777   : > { %2022 = vpush %v1148_v25 }
 0x778   : > { %2024 = vpush %v1155_v26  ;;  %v2164_v10 = vpop.eup %2163 }
 0x779   : > { %2026 = vpush %v1162_v27  ;;  %v1449_v34 = vrot.slane %v2164_v10, 1  ;;  %v1455_v17 = vrot.slane %v2164_v10, 2  ;;  %v1461_v18 = vrot.slane %v2164_v10, 3  ;;  %v1467_v35 = vrot.slane %v2164_v10, 4  ;;  %v2596_v27 = vld [vmem:[%s2693_s4 + $0x70] sm:$0xff] }
 0x77a   : > { %2028 = vpush %v1169_v62  ;;  %v1473_v23 = vrot.slane %v2164_v10, 5  ;;  %v1479_v37 = vrot.slane %v2164_v10, 6  ;;  %v1485_v38 = vrot.slane %v2164_v10, 7 }
 0x77b   : > { %2030 = vpush %v1176_v29 }
 0x77c   : > { %2032 = vpush %v2162_v4 }
 0x77d   : > { %2034 = vpush %v1401_v0 }
 0x77e   : > { %2036 = vpush %v1407_v2  ;;  %v2602_v2 = vld [vmem:[%s2693_s4 + $0x78] sm:$0xff] }
 0x77f   : > { %2038 = vpush %v1413_v30 }
 0x780   : > { %2040 = vpush %v1419_v31 }
 0x781   : > { %2042 = vpush %v1425_v8 }
 0x782   : > { %2044 = vpush %v1431_v12 }
 0x783   : > { %2046 = vpush %v1437_v32 }
 0x784   : > { %2048 = vpush %v2164_v10 }
 0x785   : > { %2050 = vpush %v1449_v34 }
 0x786   : > { %2052 = vpush %v1455_v17 }
 0x787   : > { %2054 = vpush %v1461_v18 }
 0x788   : > { %2056 = vpush %v1467_v35 }
 0x789   : > { %2058 = vpush %v1473_v23 }
 0x78a   : > { %2060 = vpush %v1479_v37 }
 0x78b   : > { %2062 = vpush %v1485_v38 }
 0x79c   : > { %s2508_s20 = spop %2000 }
 0x79d   : > { %v1073_v52 = vstv %s2508_s20 }
 0x79e   : > { %s2003_s30 = spop %2002  ;;  %v1075_v9 = vmul.f32 %v1073_v52, %v2533_v44 }
 0x79f   : > { %s2005_s7 = spop %2004  ;;  %v1080_v40 = vstv %s2003_s30 }
 0x7a0   : > { %s2007_s8 = spop %2006  ;;  %v1087_v33 = vstv %s2005_s7  ;;  %v1082_v46 = vmul.f32 %v2513_v39, %v1080_v40 }
 0x7a1   : > { %s2009_s17 = spop %2008  ;;  %v1094_v45 = vstv %s2007_s8  ;;  %v1089_v56 = vmul.f32 %v2518_v42, %v1087_v33 }
 0x7a2   : > { %s2011_s16 = spop %2010  ;;  %v1101_v47 = vstv %s2009_s17  ;;  %v1096_v57 = vmul.f32 %v2523_v43, %v1094_v45  ;;  %v1181_v22 = vadd.f32 %v1082_v46, %v1075_v9 }
 0x7a3   : > { %s2013_s29 = spop %2012  ;;  %v1108_v36 = vstv %s2011_s16  ;;  %v1103_v58 = vmul.f32 %v2528_v3, %v1101_v47 }
 0x7a4   : > { %v1115_v50 = vstv %s2013_s29  ;;  %s2015_s7 = spop %2014  ;;  %v1110_v61 = vmul.f32 %v2538_v48, %v1108_v36  ;;  %v1182_v24 = vadd.f32 %v1096_v57, %v1089_v56 }
 0x7a5   : > { %v1122_v53 = vstv %s2015_s7  ;;  %s2017_s16 = spop %2016  ;;  %v1117_v63 = vmul.f32 %v2543_v49, %v1115_v50 }
 0x7a6   : > { %v1129_v59 = vstv %s2017_s16  ;;  %s2019_s20 = spop %2018  ;;  %v1124_v5 = vmul.f32 %v2548_v51, %v1122_v53  ;;  %v1183_v4 = vadd.f32 %v1110_v61, %v1103_v58  ;;  %v1189_v18 = vadd.f32 %v1182_v24, %v1181_v22 }
 0x7a7   : > { %v1136_v6 = vstv %s2019_s20  ;;  %s2021_s29 = spop %2020  ;;  %v1131_v11 = vmul.f32 %v2555_v54, %v1129_v59 }
 0x7a8   : > { %v1138_v14 = vmul.f32 %v2560_v55, %v1136_v6  ;;  %v1143_v15 = vstv %s2021_s29  ;;  %s2023_s15 = spop %2022  ;;  %v1184_v62 = vadd.f32 %v1124_v5, %v1117_v63 }
 0x7a9   : > { %v1145_v19 = vmul.f32 %v2568_v60, %v1143_v15  ;;  %v1150_v20 = vstv %s2023_s15  ;;  %s2025_s8 = spop %2024 }
 0x7aa   : > { %v1152_v25 = vmul.f32 %v2576_v7, %v1150_v20  ;;  %v1157_v26 = vstv %s2025_s8  ;;  %s2027_s9 = spop %2026  ;;  %v1185_v30 = vadd.f32 %v1138_v14, %v1131_v11  ;;  %v1190_v35 = vadd.f32 %v1184_v62, %v1183_v4 }
 0x7ab   : > { %v1159_v29 = vmul.f32 %v2584_v16, %v1157_v26  ;;  %v1164_v0 = vstv %s2027_s9  ;;  %s2029_s30 = spop %2028 }
 0x7ac   : > { %v1186_v31 = vadd.f32 %v1152_v25, %v1145_v19  ;;  %v1166_v8 = vmul.f32 %v2590_v21, %v1164_v0  ;;  %v1171_v10 = vstv %s2029_s30  ;;  %s2031_s12 = spop %2030  ;;  %v1193_v36 = vadd.f32 %v1190_v35, %v1189_v18 }
 0x7ad   : > { %v1173_v12 = vmul.f32 %v2596_v27, %v1171_v10  ;;  %v1178_v32 = vstv %s2031_s12  ;;  %s2606_s14 = spop %2032 }
 0x7ae   : > { %v1187_v34 = vadd.f32 %v1166_v8, %v1159_v29  ;;  %v1180_v17 = vmul.f32 %v2602_v2, %v1178_v32  ;;  %s2035_s15 = spop %2034  ;;  %v1191_v23 = vadd.f32 %v1186_v31, %v1185_v30  ;;  %v1397_v46 = vstv %s2606_s14 }
 0x7af   : > { %s2037_s19 = spop %2036  ;;  %v1403_v38 = vstv %s2035_s15 }
 0x7b0   : > { %v1188_v37 = vadd.f32 %v1180_v17, %v1173_v12  ;;  %s2039_s7 = spop %2038  ;;  %v1409_v33 = vstv %s2037_s19  ;;  %v1405_v53 = vmul.f32 %v2513_v39, %v1403_v38  ;;  %v1399_v39 = vmul.f32 %v1397_v46, %v2533_v44  ;;  %s2247_s19 = smov 2  }
 0x7b1   : > { %s2041_s8 = spop %2040  ;;  %v1415_v45 = vstv %s2039_s7  ;;  %v1411_v57 = vmul.f32 %v2518_v42, %v1409_v33 }
 0x7b2   : > { %v1192_v40 = vadd.f32 %v1188_v37, %v1187_v34  ;;  %v1421_v47 = vstv %s2041_s8  ;;  %s2043_s17 = spop %2042  ;;  %v1417_v58 = vmul.f32 %v2523_v43, %v1415_v45  ;;  %v1490_v15 = vadd.f32 %v1405_v53, %v1399_v39 }
 0x7b3   : > { %v1427_v50 = vstv %s2043_s17  ;;  %s2045_s16 = spop %2044  ;;  %v1423_v59 = vmul.f32 %v2528_v3, %v1421_v47 }
 0x7b4   : > { %v1194_v52 = vadd.f32 %v1192_v40, %v1191_v23  ;;  %v1433_v56 = vstv %s2045_s16  ;;  %s2047_s9 = spop %2046  ;;  %v1429_v63 = vmul.f32 %v2538_v48, %v1427_v50  ;;  %v1491_v19 = vadd.f32 %v1417_v58, %v1411_v57 }
 0x7b5   : > { %v1439_v61 = vstv %s2047_s9  ;;  %s2049_s11 = spop %2048  ;;  %v1435_v5 = vmul.f32 %v2543_v49, %v1433_v56 }
 0x7b6   : > { %v1441_v6 = vmul.f32 %v2548_v51, %v1439_v61  ;;  %v1445_v9 = vstv %s2049_s11  ;;  %s2051_s20 = spop %2050  ;;  %v1195_v14 = vadd.f32 %v1194_v52, %v1193_v36  ;;  %v1492_v51 = vadd.f32 %v1429_v63, %v1423_v59 }
 0x7b7   : > { %v1451_v11 = vstv %s2051_s20  ;;  %s2053_s30 = spop %2052  ;;  %v1447_v42 = vmul.f32 %v2555_v54, %v1445_v9  ;;  %v1498_v62 = vadd.f32 %v1491_v19, %v1490_v15 }
 0x7b8   : > { %v1453_v43 = vmul.f32 %v2560_v55, %v1451_v11  ;;  %v1457_v3 = vstv %s2053_s30  ;;  %s2055_s18 = spop %2054  ;;  %1851 = vmatmul.mubr.msk.f32.vlgmr.msra.gmra.mrb[0].mxu1 %vm976_vm6, %v1195_v14  ;;  %v1493_v20 = vadd.f32 %v1441_v6, %v1435_v5 }
 0x7b9   : > { %v1459_v48 = vmul.f32 %v2568_v60, %v1457_v3  ;;  %v1463_v49 = vstv %s2055_s18  ;;  %s2057_s29 = spop %2056  ;;  %1509 = vmatpush1.msra.mxu1 %v1293_v13  ;;  %1572 = vmatprep.mubr.f32.mxu1 %v2246_v41 }
 0x7ba   : > { %v1465_v44 = vmul.f32 %v2576_v7, %v1463_v49  ;;  %v1469_v22 = vstv %s2057_s29  ;;  %s2059_s12 = spop %2058  ;;  %v1494_v60 = vadd.f32 %v1453_v43, %v1447_v42  ;;  %v1499_v28 = vadd.f32 %v1493_v20, %v1492_v51 }
 0x7bb   : > { %v1471_v54 = vmul.f32 %v2584_v16, %v1469_v22  ;;  %v1475_v55 = vstv %s2059_s12  ;;  %s2061_s14 = spop %2060 }
 0x7bc   : > { %v1495_v24 = vadd.f32 %v1465_v44, %v1459_v48  ;;  %v1477_v25 = vmul.f32 %v2590_v21, %v1475_v55  ;;  %v1481_v26 = vstv %s2061_s14  ;;  %s2063_s15 = spop %2062  ;;  %v1502_v0 = vadd.f32 %v1499_v28, %v1498_v62 }
 0x7bd   : > { %v1483_v7 = vmul.f32 %v2596_v27, %v1481_v26  ;;  %v1487_v4 = vstv %s2063_s15 }
 0x7be   : > { %v1496_v13 = vadd.f32 %v1477_v25, %v1471_v54  ;;  %v1489_v41 = vmul.f32 %v2602_v2, %v1487_v4  ;;  %v1500_v29 = vadd.f32 %v1495_v24, %v1494_v60 }
 0x7c0   : > { %v1497_v16 = vadd.f32 %v1489_v41, %v1483_v7 }
 0x7c2   : > { %v1501_v30 = vadd.f32 %v1497_v16, %v1496_v13 }
 0x7c4   : > { %v1503_v31 = vadd.f32 %v1501_v30, %v1500_v29 }
 0x7c6   : > { %v1504_v8 = vadd.f32 %v1503_v31, %v1502_v0 }
 0x7c8   : > { %1875 = vmatmul.mubr.msk.f32.vlgmr.msra.gmra.mrb[2].mxu1 %vm976_vm6, %v1504_v8 }
 0x88b   : > { %v1265_v21 = vpop.f32.mrb[0].mxu1 }
 0x88c   : > { %1270 = vst [vmem:[%s2486_s13] sm:$0xff] %v1265_v21  ;;  %v1267_v27 = vpop.f32.mrb[1].mxu1  ;;  %v1275_v10 = vmul.f32 %v1265_v21, %v1265_v21 }
 0x88d   : > { %1271 = vst [vmem:[%s2486_s13 + $0x8] sm:$0xff] %v1267_v27  ;;  %v1272_v12 = vadd.f32 %v1267_v27, %v1265_v21  ;;  %v1276_v32 = vmul.f32 %v1267_v27, %v1267_v27 }
 0x88f   : > { %1273 = vadd.xlane.f32.xlu1 %v1272_v12  ;;  %v1277_v34 = vadd.f32 %v1276_v32, %v1275_v10 }
 0x891   : > { %1278 = vadd.xlane.f32.xlu0 %v1277_v34 }
 0x89b   : > { %v1574_v2 = vpop.f32.mrb[2].mxu1 }
 0x89c   : > { %1876 = vst [vmem:[%s2486_s13 + $0x10] sm:$0xff] %v1574_v2  ;;  %v1576_v17 = vpop.f32.mrb[3].mxu1  ;;  %v1584_v18 = vmul.f32 %v1574_v2, %v1574_v2 }
 0x89d   : > { %1877 = vst [vmem:[%s2486_s13 + $0x18] sm:$0xff] %v1576_v17  ;;  %v1585_v35 = vmul.f32 %v1576_v17, %v1576_v17  ;;  %v1581_v23 = vadd.f32 %v1576_v17, %v1574_v2 }
 0x89f   : > { %1582 = vadd.xlane.f32.xlu1 %v1581_v23  ;;  %v1586_v37 = vadd.f32 %v1585_v35, %v1584_v18 }
 0x8a3   : > { %1587 = vadd.xlane.f32.xlu1 %v1586_v37 }
 0x91c   : > { %v1274_v38 = vpop.xlane.xlu1 %1273 }
 0x91e   : > { %v1279_v33 = vpop.xlane.xlu0 %1278 }
 0x91f   : > { %v1281_v47 = vsel %vm1280_vm7, %v1274_v38, %v1279_v33 }
 0x92c   : > { %v1583_v40 = vpop.xlane.xlu1 %1582 }
 0x930   : > { %v1588_v45 = vpop.xlane.xlu1 %1587 }
 0x931   : > { %v1589_v36 = vsel %vm1280_vm7, %v1583_v40, %v1588_v45 }
 0x932   : > { %v1590_v50 = vadd.f32 %v1589_v36, %v1281_v47 }
 0x934   : > { %1593 = vrot.lane.b32.xlu1 %v1590_v50, %s2247_s19 }
 0x9a6   : > { %v1594_v52 = vpop.permute.xlu1 %1593 }
 0x9a7   : > { %v1596_v46 = vadd.f32 %v1594_v52, %v2481_v1 }
 0x9a9   : > { %1598 = vst.msk [vmem:[#allocation2] sm:$0xff] %vm1597_vm8, %v1596_v46 }
 0x9aa PF: > { %p1878_p13 = scmp.ne.s32.totalorder %s2225_s22, 2 }
 0x9ab   : > { %p1879_p0 = scmp.ne.s32.totalorder (!%p1878_p13), %s2221_s21, 0 }
 0x9ac   : > { %1602 = sbr.rel (%p1878_p13) target bundleno = 3234 (0xca2), region = 64 }
 0x9b3   : > { %1605 = sbr.rel (%p1879_p0) target bundleno = 3086 (0xc0e), region = 68  ;;  %v1606_v53 = vld [vmem:[#allocation2] sm:$0xff] (!%p1879_p0)  ;;  %s2248_s13 = smov (!%p1879_p0), 1   ;;  %vm1639_vm9 = vcmask (!%p1879_p0), 7168   ;;  %vm1645_vm10 = vcmask (!%p1879_p0), 64560  }
 0x9b4   : > { %v1607_v56 = vmul.f32 (!%p1879_p0), 0.0009765625, %v1606_v53  ;;  %v1616_v58 = vld [vmem:[%s2694_s5] sm:$0xff] (!%p1879_p0)  ;;  %s2249_s22 = smov (!%p1879_p0), 125   ;;  %s2250_s17 = smov (!%p1879_p0), 127  }
 0x9b5   : > { %s2251_s16 = smov (!%p1879_p0), 126   ;;  %s2252_s9 = smov (!%p1879_p0), 6  }
 0x9b6   : > { %v1608_v57 = vmul.f32 (!%p1879_p0), %v1607_v56, %v1607_v56 }
 0x9b8   : > { %1610 = vrot.lane.b32.xlu0 (!%p1879_p0), %v1608_v57, %s2248_s13 }
 0x9bc   : > { %1618 = vrot.lane.b32.xlu0 %v1616_v58, %s2248_s13 }
 0xa2a   : > { %v1611_v59 = vpop.permute.xlu0 %1610 }
 0xa2b   : > { %v1613_v1 = vsub.f32 %v1607_v56, %v1611_v59 }
 0xa2d   : > { %v1614_v61 = vadd.f32 1e-05, %v1613_v1 }
 0xa2e   : > { %v1619_v63 = vpop.permute.xlu0 %1618 }
 0xa2f   : > { %2165 = vrsqrt.f32 %v1614_v61 }
 0xa39   : > { %v2166_v5 = vpop.eup %2165 }
 0xa3a   : > { %v1621_v6 = vmul.f32 %v2166_v5, %v1619_v63 }
 0xa3c   : > { %1632 = vrot.lane.b32.xlu0 %v1621_v6, %s2249_s22  ;;  %1623 = vrot.lane.b32.xlu1 %v1621_v6, %s2250_s17 }
 0xaae   : > { %v1624_v9 = vpop.permute.xlu1 %1623  ;;  %v1633_v42 = vpop.permute.xlu0 %1632 }
 0xaaf   : > { %v1626_v39 = vmul.f32 %v1624_v9, %v1607_v56 }
 0xab1   : > { %1628 = vrot.lane.b32.xlu1 %v1626_v39, %s2248_s13 }
 0xb23   : > { %v1629_v11 = vpop.permute.xlu1 %1628 }
 0xb24   : > { %v1631_v14 = vsub.f32 %v1616_v58, %v1629_v11 }
 0xb26   : > { %1636 = vrot.lane.b32.xlu1 %v1631_v14, %s2251_s16 }
 0xb98   : > { %v1637_v43 = vpop.permute.xlu1 %1636 }
 0xb99   : > { %v1640_v3 = vsel %vm1639_vm9, %v1633_v42, %v1637_v43 }
 0xb9a   : > { %1642 = vrot.lane.b32.xlu0 %v1640_v3, %s2252_s9 }
 0xc0c   : > { %v1643_v15 = vpop.permute.xlu0 %1642 }
 0xc0d   : > { %1646 = vst.msk [vmem:[#allocation2] sm:$0xff] %vm1645_vm10, %v1643_v15 }
 0xc0e PF: > { %v2253_v48 = vmov 6   ;;  %v2254_v49 = vmov 7   ;;  %s1902_s11 = sshll.u32 %s2221_s21, 5  ;;  %v1666_v24 = vld [vmem:[%s2335_s10] sm:$0xff]  ;;  %v1667_v7 = vld [vmem:[%s2335_s10 + $0x8] sm:$0xff]  ;;  %v1886_v4 = vld [vmem:[%s2335_s10 + $0x10] sm:$0xff] }
 0xc0f   : > { %2167 = vset.pattern.permute.xlu0 %v2253_v48  ;;  %s1650_s20 = scalar_lea.vmem [#allocation3], %s1902_s11  ;;  %v1887_v62 = vld [vmem:[%s2335_s10 + $0x18] sm:$0xff] }
 0xc10   : > { %v1651_v20 = vld [vmem:[%s1650_s20] sm:$0xff]  ;;  %v1652_v44 = vld [vmem:[%s1650_s20 + $0x8] sm:$0xff]  ;;  %v1884_v22 = vld [vmem:[%s1650_s20 + $0x10] sm:$0xff] }
 0xc11   : > { %v1885_v54 = vld [vmem:[%s1650_s20 + $0x18] sm:$0xff] }
 0xc14   : > { %v1647_v19 = vld [vmem:[#allocation2] sm:$0xff] }
 0xc15   : > { %1655 = vperm.xlu0 %2167, %v1647_v19  }
 0xc19   : > { %2168 = vset.pattern.permute.xlu0 %v2254_v49 }
 0xc1a   : > { %1661 = vperm.xlu0 %2168, %v1647_v19  }
 0xc94   : > { %v1656_v51 = vpop.permute.xlu0 %1655 }
 0xc95   : > { %v1658_v55 = vmul.f32 %v1656_v51, %v1651_v20  ;;  %v1659_v60 = vmul.f32 %v1656_v51, %v1652_v44  ;;  %v1680_v25 = vmul.f32 %v1884_v22, %v1656_v51  ;;  %v1681_v26 = vmul.f32 %v1885_v54, %v1656_v51 }
 0xc99   : > { %v1662_v28 = vpop.permute.xlu0 %1661 }
 0xc9a   : > { %v1664_v13 = vadd.f32 %v1662_v28, %v1658_v55  ;;  %v1665_v41 = vadd.f32 %v1662_v28, %v1659_v60  ;;  %v1682_v29 = vadd.f32 %v1680_v25, %v1662_v28  ;;  %v1683_v16 = vadd.f32 %v1681_v26, %v1662_v28 }
 0xc9c   : > { %v1668_v0 = vadd.f32 %v1666_v24, %v1664_v13  ;;  %v1669_v30 = vadd.f32 %v1667_v7, %v1665_v41  ;;  %v1687_v31 = vadd.f32 %v1886_v4, %v1682_v29  ;;  %v1688_v8 = vadd.f32 %v1887_v62, %v1683_v16 }
 0xc9e   : > { %v1670_v21 = vmax.f32 %v1668_v0, 0.0  ;;  %v1671_v27 = vmax.f32 %v1669_v30, 0.0  ;;  %v1689_v10 = vmax.f32 %v1687_v31, 0.0  ;;  %v1690_v12 = vmax.f32 %v1688_v8, 0.0 }
 0xca0   : > { %1672 = vst [vmem:[%s1650_s20] sm:$0xff] %v1670_v21  ;;  %1673 = vst [vmem:[%s1650_s20 + $0x8] sm:$0xff] %v1671_v27 }
 0xca1   : > { %1888 = vst [vmem:[%s1650_s20 + $0x10] sm:$0xff] %v1689_v10  ;;  %1889 = vst [vmem:[%s1650_s20 + $0x18] sm:$0xff] %v1690_v12 }
 0xca2 PF: > { %p2648_p1 = scmp.eq.s32.totalorder %s1771_s26, 5  ;;  %s2255_s10 = smov [#allocation3]  }
 0xca3   : > { %s1699_s30 = sshll.u32 %s2255_s10, 4  ;;  %s1700_s30 = int_to_ptr.vmem [resolvable:$true] %s1699_s30 }
 0xca4   : > { %s2169_s18 = scalar_lea.vmem %s1700_s30, 1024  ;;  %p2176_p5 = scmp.lt.s32.totalorder %s1700_s30, %s1700_s30 }
 0xca5   : > { %p2170_p2 = scmp.ne.s32.totalorder %s1700_s30, %s2169_s18  ;;  %p2177_p6 = scmp.lt.s32.totalorder %s2169_s18, %s2169_s18 }
 0xca7   : > { %p2171_p3 = pnand %p2170_p2, %p2648_p1  ;;  %p2178_p7 = por %p2177_p6, %p2176_p5 }
 0xca9   : > { %p2172_p4 = pneg %p2171_p3 }
 0xcab   : > { %p2179_p8 = pnand %p2178_p7, %p2172_p4 }
 0xcad   : > { %2182 = shalt.err (!%p2179_p8)
}
 0xcae   : > { %s2183_s26 = scalar_lea.hbm %s2695_s6, 1024 }
 0xcaf   : > { %p2184_p9 = scmp.ne.s32.totalorder %s2695_s6, %s2183_s26  ;;  %p2189_p12 = scmp.lt.u32.totalorder %s2183_s26, %s2695_s6 }
 0xcb1   : > { %p2185_p10 = pnand %p2184_p9, %p2648_p1 }
 0xcb3   : > { %p2186_p11 = pneg %p2185_p10 }
 0xcb5   : > { %p2191_p13 = pnand %p2189_p12, %p2186_p11 }
 0xcb7   : > { %2194 = shalt.err (!%p2191_p13)
}
 0xcb8   : > { %s2256_s7 = smov 256   ;;  %s2257_s8 = smov 16  }
 0xcb9   : > { %2065 = dma.vmem_to_hbm [thread:$0]  (%p2648_p1), %s1700_s30, 1024, %s2695_s6, [#allocation4], %s2256_s7, %s2256_s7, %s2257_s8  }
 0xcba   : > { %2216 = dma.done.wait (%p2648_p1), [#allocation4], 1024  }
 0xcbb   : > { %2218 = vsyncadd (%p2648_p1), [#allocation4], 4294966272 }
 0xcbc PF: > { %s17_s25 = sadd.s32 1, %s2237_s25   ;;  %s2697_s21 = smov %s2229_s23 }
 0xcbd   : > { %p14_p0 = scmp.ge.s32.totalorder %s17_s25, 8   ;;  %s2698_s22 = smov %s2233_s24 }
 0xcbe   : > { %s2699_s23 = smov %s2702_s27  ;;  %s2700_s24 = smov %s2706_s28 }
 0xcbf   :  { %16 = sbr.rel (!%p14_p0) target bundleno = 3 (0x3), region = 133 }
 0xcc6   :  { %1715 = vsyncpa [#allocation4], 1 }
 0xcc7   :  { %1717 = vsyncpa [#allocation4 + $0x1], 1 }

</bundles_post_ra>
